<compile_context>
chip_gen: v7x
topology: tpu7x:2x2x1
jax: 0.10.0
libtpu: 0.0.40
codegen_flags: <defaults>
</compile_context>

<pallas_src>
import jax
import jax.numpy as jnp
from jax import lax
from jax.experimental import pallas as pl
from jax.experimental.pallas import tpu as pltpu


# ----------------------------------------------------------------------------
# Fused kernel: one-hot embedding -> batched input projection -> LSTM
# recurrence -> linear head.  One grid step = one batch chunk, all T steps.
# ----------------------------------------------------------------------------
def lstm_lm_kernel(ids_ref, emb_ref, wih_ref, whh_ref, b_ref, h0_ref, c0_ref,
                   wlin_ref, blin_ref,
                   out_ref, hT_ref, cT_ref,
                   xp_sc, hseq_sc):
    Bc, T, _ = ids_ref.shape
    V, E = emb_ref.shape
    H = h0_ref.shape[-1]

    # --- Fused embedding lookup: exact one-hot matmul on the MXU. -----------
    # ids come in pre-shaped (Bc, T, 1) so no in-kernel relayout is needed.
    col = lax.broadcasted_iota(jnp.int32, (Bc, T, V), 2)
    onehot = (col == ids_ref[...]).astype(jnp.float32)         # (Bc, T, V)
    onehot = onehot.reshape(Bc * T, V)                         # free leading merge
    x_flat = jnp.dot(onehot, emb_ref[...],
                     preferred_element_type=jnp.float32)       # (Bc*T, E)

    # --- Prologue: one batched input projection for the whole chunk. --------
    xp = (jnp.dot(x_flat, wih_ref[...], preferred_element_type=jnp.float32)
          + b_ref[...])                                        # (Bc*T, 4H)
    xp_sc[...] = xp.reshape(Bc, T, 4 * H)                      # batch-major slab

    # --- Serial recurrence: only h_prev @ W_hh^T is on the dependency chain. -
    whh = whh_ref[...]                                         # hoisted weight load

    def step(t, carry):
        h_prev, c_prev = carry
        gx = xp_sc[:, pl.ds(t, 1), :][:, 0, :]                 # (Bc, 4H) precomputed
        gates = gx + jnp.dot(h_prev, whh, preferred_element_type=jnp.float32)
        i_g = jax.nn.sigmoid(gates[:, 0 * H:1 * H])
        f_g = jax.nn.sigmoid(gates[:, 1 * H:2 * H])
        g_g = jnp.tanh(gates[:, 2 * H:3 * H])
        o_g = jax.nn.sigmoid(gates[:, 3 * H:4 * H])
        c_new = f_g * c_prev + i_g * g_g
        h_new = o_g * jnp.tanh(c_new)
        hseq_sc[:, pl.ds(t, 1), :] = h_new[:, None, :]         # batch-major store
        return h_new, c_new

    h_last, c_last = lax.fori_loop(0, T, step,
                                   (h0_ref[...], c0_ref[...]), unroll=True)

    # Final state written exactly once per chunk.
    hT_ref[...] = h_last
    cT_ref[...] = c_last

    # --- Epilogue: fused linear head on the VMEM-resident hidden slab. ------
    h_flat = hseq_sc[...].reshape(Bc * T, H)                   # free merge
    out_ref[...] = (jnp.dot(h_flat, wlin_ref[...],
                            preferred_element_type=jnp.float32)
                    + blin_ref[...])


def lstm_lm_forward(x_ids, emb, w_ih_T, w_hh_T, b_lstm, w_lin_T, b_lin, h0, c0):
    """x_ids: (B, T) int32 token ids.  Returns (logits (B*T, V), h_T, c_T)."""
    B, T = x_ids.shape
    V, E = emb.shape
    H = h0.shape[-1]
    Vout = w_lin_T.shape[-1]

    # One batch chunk per grid step; chunks of 8 keep blocks (8,128)-aligned
    # and let the "parallel" axis shard across TensorCores (v7x) at larger B.
    Bc = B if B <= 8 else 8
    assert B % Bc == 0
    n_chunks = B // Bc

    # Move the tiny (B, T) -> (B, T, 1) reshape to XLA glue so the in-kernel
    # one-hot compare needs no relayout.
    ids3 = x_ids.astype(jnp.int32)[:, :, None]

    return pl.pallas_call(
        lstm_lm_kernel,
        out_shape=(
            jax.ShapeDtypeStruct((B * T, Vout), jnp.float32),   # logits, batch-major
            jax.ShapeDtypeStruct((B, H), jnp.float32),          # h_T
            jax.ShapeDtypeStruct((B, H), jnp.float32),          # c_T
        ),
        grid_spec=pltpu.PrefetchScalarGridSpec(
            num_scalar_prefetch=0,
            grid=(n_chunks,),
            in_specs=[
                pl.BlockSpec((Bc, T, 1), lambda i: (i, 0, 0)),   # token ids chunk
                pl.BlockSpec((V, E), lambda i: (0, 0)),          # embedding table
                pl.BlockSpec((E, 4 * H), lambda i: (0, 0)),      # W_ih^T
                pl.BlockSpec((H, 4 * H), lambda i: (0, 0)),      # W_hh^T
                pl.BlockSpec((1, 4 * H), lambda i: (0, 0)),      # folded LSTM bias
                pl.BlockSpec((Bc, H), lambda i: (i, 0)),         # h0 chunk
                pl.BlockSpec((Bc, H), lambda i: (i, 0)),         # c0 chunk
                pl.BlockSpec((H, Vout), lambda i: (0, 0)),       # W_lin^T
                pl.BlockSpec((1, Vout), lambda i: (0, 0)),       # b_lin
            ],
            out_specs=[
                pl.BlockSpec((Bc * T, Vout), lambda i: (i, 0)),  # logits rows of chunk
                pl.BlockSpec((Bc, H), lambda i: (i, 0)),
                pl.BlockSpec((Bc, H), lambda i: (i, 0)),
            ],
            scratch_shapes=[
                pltpu.VMEM((Bc, T, 4 * H), jnp.float32),         # input-proj slab
                pltpu.VMEM((Bc, T, H), jnp.float32),             # hidden slab
            ],
        ),
        compiler_params=pltpu.CompilerParams(
            dimension_semantics=("parallel",)),
    )(ids3, emb, w_ih_T, w_hh_T, b_lstm, h0, c0, w_lin_T, b_lin)


# ----------------------------------------------------------------------------
# MyLSTM forward wrapper (mirrors the PyTorch module's forward)
# ----------------------------------------------------------------------------
def my_lstm_forward(params, x_ids, h):
    """x_ids: (B, T) int32 token ids; h = (h0, c0), each (num_layers=1, B, H)."""
    h0, c0 = h
    # TODO(synk): for production-size vocabularies, do the embedding lookup
    # outside the kernel (jnp.take / DMA gather) instead of the one-hot matmul.
    logits, h_T, c_T = lstm_lm_forward(
        x_ids,
        params["embedding"],
        params["w_ih_T"], params["w_hh_T"], params["b_lstm"],
        params["w_lin_T"], params["b_lin"],
        h0[0], c0[0],
    )
    return logits, (h_T[None], c_T[None])


# ----------------------------------------------------------------------------
# Pure-JAX reference for validation
# ----------------------------------------------------------------------------
def reference_forward(params, x_ids, h):
    h0, c0 = h
    x_emb = jnp.take(params["embedding"], x_ids, axis=0)        # (B, T, E)
    H = h0.shape[-1]

    def step(carry, x_t):
        hp, cp = carry
        gates = x_t @ params["w_ih_T"] + hp @ params["w_hh_T"] + params["b_lstm"][0]
        i_g = jax.nn.sigmoid(gates[:, 0 * H:1 * H])
        f_g = jax.nn.sigmoid(gates[:, 1 * H:2 * H])
        g_g = jnp.tanh(gates[:, 2 * H:3 * H])
        o_g = jax.nn.sigmoid(gates[:, 3 * H:4 * H])
        cn = f_g * cp + i_g * g_g
        hn = o_g * jnp.tanh(cn)
        return (hn, cn), hn

    (h_T, c_T), out_seq = lax.scan(step, (h0[0], c0[0]),
                                   jnp.transpose(x_emb, (1, 0, 2)))
    out_bth = jnp.transpose(out_seq, (1, 0, 2))
    B, T, _ = out_bth.shape
    out_flat = out_bth.reshape(B * T, H)
    logits = out_flat @ params["w_lin_T"] + params["b_lin"][0]
    return logits, (h_T[None], c_T[None])


if __name__ == "__main__":
    # Small, TPU-friendly shapes consistent with the module.
    VOCAB = 256
    EMBED = 128
    HIDDEN = 128
    NUM_LAYERS = 1
    B, T = 2, 8          # T a multiple of 8 keeps in-kernel reshapes free

    key = jax.random.PRNGKey(0)
    ks = jax.random.split(key, 8)
    scale = 1.0 / jnp.sqrt(HIDDEN)

    params = {
        "embedding": jax.random.normal(ks[0], (VOCAB, EMBED), jnp.float32) * 0.1,
        # PyTorch stores W_ih (4H, E), W_hh (4H, H); kept pre-transposed here.
        "w_ih_T": jax.random.uniform(ks[1], (EMBED, 4 * HIDDEN), jnp.float32,
                                     -scale, scale),
        "w_hh_T": jax.random.uniform(ks[2], (HIDDEN, 4 * HIDDEN), jnp.float32,
                                     -scale, scale),
        # bias = b_ih + b_hh folded together, kept 2-D for clean VMEM layout.
        "b_lstm": jax.random.uniform(ks[3], (1, 4 * HIDDEN), jnp.float32,
                                     -scale, scale),
        "w_lin_T": jax.random.uniform(ks[4], (HIDDEN, VOCAB), jnp.float32,
                                      -scale, scale),
        "b_lin": jax.random.uniform(ks[5], (1, VOCAB), jnp.float32,
                                    -scale, scale),
    }

    x_ids = jax.random.randint(ks[6], (B, T), 0, VOCAB, dtype=jnp.int32)
    h0 = jnp.zeros((NUM_LAYERS, B, HIDDEN), jnp.float32)
    c0 = jnp.zeros((NUM_LAYERS, B, HIDDEN), jnp.float32)

    logits, (h_T, c_T) = my_lstm_forward(params, x_ids, (h0, c0))
    jax.block_until_ready((logits, h_T, c_T))

    ref_logits, (ref_h, ref_c) = reference_forward(params, x_ids, (h0, c0))
    assert logits.shape == (B * T, VOCAB)
    assert h_T.shape == (NUM_LAYERS, B, HIDDEN) and c_T.shape == (NUM_LAYERS, B, HIDDEN)
    assert jnp.allclose(logits, ref_logits, rtol=1e-4, atol=1e-4)
    assert jnp.allclose(h_T, ref_h, rtol=1e-4, atol=1e-4)
    assert jnp.allclose(c_T, ref_c, rtol=1e-4, atol=1e-4)

    # TODO(synk): generate()/multinomial sampling, str2tensor and
    # cosine-similarity scoring are host-side utilities, not part of forward().
    print("KERNEL_OK")
</pallas_src>

<mosaic_0001>
module attributes {stable_mosaic.version = 11 : i64} {
  func.func @lstm_lm_kernel(%arg0: i32, %arg1: memref<2x8x1xi32, #tpu.memory_space<vmem>>, %arg2: memref<256x128xf32, #tpu.memory_space<vmem>>, %arg3: memref<128x512xf32, #tpu.memory_space<vmem>>, %arg4: memref<128x512xf32, #tpu.memory_space<vmem>>, %arg5: memref<1x512xf32, #tpu.memory_space<vmem>>, %arg6: memref<2x128xf32, #tpu.memory_space<vmem>>, %arg7: memref<2x128xf32, #tpu.memory_space<vmem>>, %arg8: memref<128x256xf32, #tpu.memory_space<vmem>>, %arg9: memref<1x256xf32, #tpu.memory_space<vmem>>, %arg10: memref<16x256xf32, #tpu.memory_space<vmem>>, %arg11: memref<2x128xf32, #tpu.memory_space<vmem>>, %arg12: memref<2x128xf32, #tpu.memory_space<vmem>>, %arg13: memref<2x8x512xf32, #tpu.memory_space<vmem>>, %arg14: memref<2x8x128xf32, #tpu.memory_space<vmem>>) attributes {dimension_semantics = [#tpu.dimension_semantics<parallel>], iteration_bounds = array<i64: 1>, scalar_prefetch = 0 : i64, scratch_operands = 2 : i64, tpu.core_type = #tpu.core_type<tc>, window_params = [{transform_indices = @transform_0, window_bounds = array<i64: 2, 8, 1>}, {pipeline_mode = #tpu.pipeline_mode<synchronous>, transform_indices = @transform_1, window_bounds = array<i64: 256, 128>}, {pipeline_mode = #tpu.pipeline_mode<synchronous>, transform_indices = @transform_2, window_bounds = array<i64: 128, 512>}, {pipeline_mode = #tpu.pipeline_mode<synchronous>, transform_indices = @transform_3, window_bounds = array<i64: 128, 512>}, {pipeline_mode = #tpu.pipeline_mode<synchronous>, transform_indices = @transform_4, window_bounds = array<i64: 1, 512>}, {transform_indices = @transform_5, window_bounds = array<i64: 2, 128>}, {transform_indices = @transform_6, window_bounds = array<i64: 2, 128>}, {pipeline_mode = #tpu.pipeline_mode<synchronous>, transform_indices = @transform_7, window_bounds = array<i64: 128, 256>}, {pipeline_mode = #tpu.pipeline_mode<synchronous>, transform_indices = @transform_8, window_bounds = array<i64: 1, 256>}, {transform_indices = @transform_9, window_bounds = array<i64: 16, 256>}, {transform_indices = @transform_10, window_bounds = array<i64: 2, 128>}, {transform_indices = @transform_11, window_bounds = array<i64: 2, 128>}]} {
    %0 = tpu.iota {dimensions = array<i32: 2>} : vector<2x8x256xi32>
    %c0 = arith.constant 0 : index
    %c0_0 = arith.constant 0 : index
    %c0_1 = arith.constant 0 : index
    %1 = vector.load %arg1[%c0, %c0_0, %c0_1] : memref<2x8x1xi32, #tpu.memory_space<vmem>>, vector<2x8x1xi32>
    %2 = vector.broadcast %1 : vector<2x8x1xi32> to vector<2x8x256xi32>
    %3 = arith.cmpi eq, %0, %2 : vector<2x8x256xi32>
    %4 = arith.extui %3 : vector<2x8x256xi1> to vector<2x8x256xi32>
    %5 = arith.sitofp %4 : vector<2x8x256xi32> to vector<2x8x256xf32>
    %6 = vector.shape_cast %5 : vector<2x8x256xf32> to vector<16x256xf32>
    %c0_2 = arith.constant 0 : index
    %c0_3 = arith.constant 0 : index
    %7 = vector.load %arg2[%c0_2, %c0_3] : memref<256x128xf32, #tpu.memory_space<vmem>>, vector<256x128xf32>
    %cst = arith.constant dense<0.000000e+00> : vector<16x128xf32>
    %8 = tpu.matmul %6, %7, %cst {dimension_numbers = #tpu.dot_dimension_numbers<[1], [0], [0], [1], [0, 0, 1, 1], [], []>} : vector<16x256xf32>, vector<256x128xf32>, vector<16x128xf32> -> vector<16x128xf32>
    %c0_4 = arith.constant 0 : index
    %c0_5 = arith.constant 0 : index
    %9 = vector.load %arg3[%c0_4, %c0_5] : memref<128x512xf32, #tpu.memory_space<vmem>>, vector<128x512xf32>
    %cst_6 = arith.constant dense<0.000000e+00> : vector<16x512xf32>
    %10 = tpu.matmul %8, %9, %cst_6 {dimension_numbers = #tpu.dot_dimension_numbers<[1], [0], [0], [1], [0, 0, 1, 1], [], []>} : vector<16x128xf32>, vector<128x512xf32>, vector<16x512xf32> -> vector<16x512xf32>
    %c0_7 = arith.constant 0 : index
    %c0_8 = arith.constant 0 : index
    %11 = vector.load %arg5[%c0_7, %c0_8] : memref<1x512xf32, #tpu.memory_space<vmem>>, vector<1x512xf32>
    %12 = vector.broadcast %11 : vector<1x512xf32> to vector<16x512xf32>
    %13 = arith.addf %10, %12 : vector<16x512xf32>
    %14 = vector.shape_cast %13 : vector<16x512xf32> to vector<2x8x512xf32>
    %c0_9 = arith.constant 0 : index
    %c0_10 = arith.constant 0 : index
    %c0_11 = arith.constant 0 : index
    %15 = vector.load %arg13[%c0_9, %c0_10, %c0_11] : memref<2x8x512xf32, #tpu.memory_space<vmem>>, vector<2x8x512xf32>
    tpu.vector_store %arg13[%c0_9, %c0_10, %c0_11], %14 {strides = array<i32>} : memref<2x8x512xf32, #tpu.memory_space<vmem>>, vector<2x8x512xf32>,
    %c0_12 = arith.constant 0 : index
    %c0_13 = arith.constant 0 : index
    %16 = vector.load %arg4[%c0_12, %c0_13] : memref<128x512xf32, #tpu.memory_space<vmem>>, vector<128x512xf32>
    %c0_14 = arith.constant 0 : index
    %c0_15 = arith.constant 0 : index
    %17 = vector.load %arg6[%c0_14, %c0_15] : memref<2x128xf32, #tpu.memory_space<vmem>>, vector<2x128xf32>
    %c0_16 = arith.constant 0 : index
    %c0_17 = arith.constant 0 : index
    %18 = vector.load %arg7[%c0_16, %c0_17] : memref<2x128xf32, #tpu.memory_space<vmem>>, vector<2x128xf32>
    %c0_i32 = arith.constant 0 : i32
    %c0_18 = arith.constant 0 : index
    %19 = arith.index_cast %c0_i32 : i32 to index
    %c0_19 = arith.constant 0 : index
    %20 = vector.load %arg13[%c0_18, %19, %c0_19] : memref<2x8x512xf32, #tpu.memory_space<vmem>>, vector<2x1x512xf32>
    %21 = vector.shape_cast %20 : vector<2x1x512xf32> to vector<2x512xf32>
    %cst_20 = arith.constant dense<0.000000e+00> : vector<2x512xf32>
    %22 = tpu.matmul %17, %16, %cst_20 {dimension_numbers = #tpu.dot_dimension_numbers<[1], [0], [0], [1], [0, 0, 1, 1], [], []>} : vector<2x128xf32>, vector<128x512xf32>, vector<2x512xf32> -> vector<2x512xf32>
    %23 = arith.addf %21, %22 : vector<2x512xf32>
    %24 = vector.extract_strided_slice %23 {offsets = [0, 0], sizes = [2, 128], strides = [1, 1]} : vector<2x512xf32> to vector<2x128xf32>
    %25 = arith.negf %24 : vector<2x128xf32>
    %26 = math.exp %25 : vector<2x128xf32>
    %cst_21 = arith.constant 1.000000e+00 : f32
    %27 = vector.broadcast %cst_21 : f32 to vector<2x128xf32>
    %28 = arith.addf %27, %26 : vector<2x128xf32>
    %29 = arith.divf %27, %28 : vector<2x128xf32>
    %30 = vector.extract_strided_slice %23 {offsets = [0, 128], sizes = [2, 128], strides = [1, 1]} : vector<2x512xf32> to vector<2x128xf32>
    %31 = arith.negf %30 : vector<2x128xf32>
    %32 = math.exp %31 : vector<2x128xf32>
    %cst_22 = arith.constant 1.000000e+00 : f32
    %33 = vector.broadcast %cst_22 : f32 to vector<2x128xf32>
    %34 = arith.addf %33, %32 : vector<2x128xf32>
    %35 = arith.divf %33, %34 : vector<2x128xf32>
    %36 = vector.extract_strided_slice %23 {offsets = [0, 256], sizes = [2, 128], strides = [1, 1]} : vector<2x512xf32> to vector<2x128xf32>
    %37 = math.tanh %36 : vector<2x128xf32>
    %38 = vector.extract_strided_slice %23 {offsets = [0, 384], sizes = [2, 128], strides = [1, 1]} : vector<2x512xf32> to vector<2x128xf32>
    %39 = arith.negf %38 : vector<2x128xf32>
    %40 = math.exp %39 : vector<2x128xf32>
    %cst_23 = arith.constant 1.000000e+00 : f32
    %41 = vector.broadcast %cst_23 : f32 to vector<2x128xf32>
    %42 = arith.addf %41, %40 : vector<2x128xf32>
    %43 = arith.divf %41, %42 : vector<2x128xf32>
    %44 = arith.mulf %35, %18 : vector<2x128xf32>
    %45 = arith.mulf %29, %37 : vector<2x128xf32>
    %46 = arith.addf %44, %45 : vector<2x128xf32>
    %47 = math.tanh %46 : vector<2x128xf32>
    %48 = arith.mulf %43, %47 : vector<2x128xf32>
    %49 = vector.shape_cast %48 : vector<2x128xf32> to vector<2x1x128xf32>
    %c0_24 = arith.constant 0 : index
    %50 = arith.index_cast %c0_i32 : i32 to index
    %c0_25 = arith.constant 0 : index
    %51 = vector.load %arg14[%c0_24, %50, %c0_25] : memref<2x8x128xf32, #tpu.memory_space<vmem>>, vector<2x1x128xf32>
    tpu.vector_store %arg14[%c0_24, %50, %c0_25], %49 {strides = array<i32>} : memref<2x8x128xf32, #tpu.memory_space<vmem>>, vector<2x1x128xf32>,
    %c1_i32 = arith.constant 1 : i32
    %c0_26 = arith.constant 0 : index
    %52 = arith.index_cast %c1_i32 : i32 to index
    %c0_27 = arith.constant 0 : index
    %53 = vector.load %arg13[%c0_26, %52, %c0_27] : memref<2x8x512xf32, #tpu.memory_space<vmem>>, vector<2x1x512xf32>
    %54 = vector.shape_cast %53 : vector<2x1x512xf32> to vector<2x512xf32>
    %cst_28 = arith.constant dense<0.000000e+00> : vector<2x512xf32>
    %55 = tpu.matmul %48, %16, %cst_28 {dimension_numbers = #tpu.dot_dimension_numbers<[1], [0], [0], [1], [0, 0, 1, 1], [], []>} : vector<2x128xf32>, vector<128x512xf32>, vector<2x512xf32> -> vector<2x512xf32>
    %56 = arith.addf %54, %55 : vector<2x512xf32>
    %57 = vector.extract_strided_slice %56 {offsets = [0, 0], sizes = [2, 128], strides = [1, 1]} : vector<2x512xf32> to vector<2x128xf32>
    %58 = arith.negf %57 : vector<2x128xf32>
    %59 = math.exp %58 : vector<2x128xf32>
    %cst_29 = arith.constant 1.000000e+00 : f32
    %60 = vector.broadcast %cst_29 : f32 to vector<2x128xf32>
    %61 = arith.addf %60, %59 : vector<2x128xf32>
    %62 = arith.divf %60, %61 : vector<2x128xf32>
    %63 = vector.extract_strided_slice %56 {offsets = [0, 128], sizes = [2, 128], strides = [1, 1]} : vector<2x512xf32> to vector<2x128xf32>
    %64 = arith.negf %63 : vector<2x128xf32>
    %65 = math.exp %64 : vector<2x128xf32>
    %cst_30 = arith.constant 1.000000e+00 : f32
    %66 = vector.broadcast %cst_30 : f32 to vector<2x128xf32>
    %67 = arith.addf %66, %65 : vector<2x128xf32>
    %68 = arith.divf %66, %67 : vector<2x128xf32>
    %69 = vector.extract_strided_slice %56 {offsets = [0, 256], sizes = [2, 128], strides = [1, 1]} : vector<2x512xf32> to vector<2x128xf32>
    %70 = math.tanh %69 : vector<2x128xf32>
    %71 = vector.extract_strided_slice %56 {offsets = [0, 384], sizes = [2, 128], strides = [1, 1]} : vector<2x512xf32> to vector<2x128xf32>
    %72 = arith.negf %71 : vector<2x128xf32>
    %73 = math.exp %72 : vector<2x128xf32>
    %cst_31 = arith.constant 1.000000e+00 : f32
    %74 = vector.broadcast %cst_31 : f32 to vector<2x128xf32>
    %75 = arith.addf %74, %73 : vector<2x128xf32>
    %76 = arith.divf %74, %75 : vector<2x128xf32>
    %77 = arith.mulf %68, %46 : vector<2x128xf32>
    %78 = arith.mulf %62, %70 : vector<2x128xf32>
    %79 = arith.addf %77, %78 : vector<2x128xf32>
    %80 = math.tanh %79 : vector<2x128xf32>
    %81 = arith.mulf %76, %80 : vector<2x128xf32>
    %82 = vector.shape_cast %81 : vector<2x128xf32> to vector<2x1x128xf32>
    %c0_32 = arith.constant 0 : index
    %83 = arith.index_cast %c1_i32 : i32 to index
    %c0_33 = arith.constant 0 : index
    %84 = vector.load %arg14[%c0_32, %83, %c0_33] : memref<2x8x128xf32, #tpu.memory_space<vmem>>, vector<2x1x128xf32>
    tpu.vector_store %arg14[%c0_32, %83, %c0_33], %82 {strides = array<i32>} : memref<2x8x128xf32, #tpu.memory_space<vmem>>, vector<2x1x128xf32>,
    %c2_i32 = arith.constant 2 : i32
    %c0_34 = arith.constant 0 : index
    %85 = arith.index_cast %c2_i32 : i32 to index
    %c0_35 = arith.constant 0 : index
    %86 = vector.load %arg13[%c0_34, %85, %c0_35] : memref<2x8x512xf32, #tpu.memory_space<vmem>>, vector<2x1x512xf32>
    %87 = vector.shape_cast %86 : vector<2x1x512xf32> to vector<2x512xf32>
    %cst_36 = arith.constant dense<0.000000e+00> : vector<2x512xf32>
    %88 = tpu.matmul %81, %16, %cst_36 {dimension_numbers = #tpu.dot_dimension_numbers<[1], [0], [0], [1], [0, 0, 1, 1], [], []>} : vector<2x128xf32>, vector<128x512xf32>, vector<2x512xf32> -> vector<2x512xf32>
    %89 = arith.addf %87, %88 : vector<2x512xf32>
    %90 = vector.extract_strided_slice %89 {offsets = [0, 0], sizes = [2, 128], strides = [1, 1]} : vector<2x512xf32> to vector<2x128xf32>
    %91 = arith.negf %90 : vector<2x128xf32>
    %92 = math.exp %91 : vector<2x128xf32>
    %cst_37 = arith.constant 1.000000e+00 : f32
    %93 = vector.broadcast %cst_37 : f32 to vector<2x128xf32>
    %94 = arith.addf %93, %92 : vector<2x128xf32>
    %95 = arith.divf %93, %94 : vector<2x128xf32>
    %96 = vector.extract_strided_slice %89 {offsets = [0, 128], sizes = [2, 128], strides = [1, 1]} : vector<2x512xf32> to vector<2x128xf32>
    %97 = arith.negf %96 : vector<2x128xf32>
    %98 = math.exp %97 : vector<2x128xf32>
    %cst_38 = arith.constant 1.000000e+00 : f32
    %99 = vector.broadcast %cst_38 : f32 to vector<2x128xf32>
    %100 = arith.addf %99, %98 : vector<2x128xf32>
    %101 = arith.divf %99, %100 : vector<2x128xf32>
    %102 = vector.extract_strided_slice %89 {offsets = [0, 256], sizes = [2, 128], strides = [1, 1]} : vector<2x512xf32> to vector<2x128xf32>
    %103 = math.tanh %102 : vector<2x128xf32>
    %104 = vector.extract_strided_slice %89 {offsets = [0, 384], sizes = [2, 128], strides = [1, 1]} : vector<2x512xf32> to vector<2x128xf32>
    %105 = arith.negf %104 : vector<2x128xf32>
    %106 = math.exp %105 : vector<2x128xf32>
    %cst_39 = arith.constant 1.000000e+00 : f32
    %107 = vector.broadcast %cst_39 : f32 to vector<2x128xf32>
    %108 = arith.addf %107, %106 : vector<2x128xf32>
    %109 = arith.divf %107, %108 : vector<2x128xf32>
    %110 = arith.mulf %101, %79 : vector<2x128xf32>
    %111 = arith.mulf %95, %103 : vector<2x128xf32>
    %112 = arith.addf %110, %111 : vector<2x128xf32>
    %113 = math.tanh %112 : vector<2x128xf32>
    %114 = arith.mulf %109, %113 : vector<2x128xf32>
    %115 = vector.shape_cast %114 : vector<2x128xf32> to vector<2x1x128xf32>
    %c0_40 = arith.constant 0 : index
    %116 = arith.index_cast %c2_i32 : i32 to index
    %c0_41 = arith.constant 0 : index
    %117 = vector.load %arg14[%c0_40, %116, %c0_41] : memref<2x8x128xf32, #tpu.memory_space<vmem>>, vector<2x1x128xf32>
    tpu.vector_store %arg14[%c0_40, %116, %c0_41], %115 {strides = array<i32>} : memref<2x8x128xf32, #tpu.memory_space<vmem>>, vector<2x1x128xf32>,
    %c3_i32 = arith.constant 3 : i32
    %c0_42 = arith.constant 0 : index
    %118 = arith.index_cast %c3_i32 : i32 to index
    %c0_43 = arith.constant 0 : index
    %119 = vector.load %arg13[%c0_42, %118, %c0_43] : memref<2x8x512xf32, #tpu.memory_space<vmem>>, vector<2x1x512xf32>
    %120 = vector.shape_cast %119 : vector<2x1x512xf32> to vector<2x512xf32>
    %cst_44 = arith.constant dense<0.000000e+00> : vector<2x512xf32>
    %121 = tpu.matmul %114, %16, %cst_44 {dimension_numbers = #tpu.dot_dimension_numbers<[1], [0], [0], [1], [0, 0, 1, 1], [], []>} : vector<2x128xf32>, vector<128x512xf32>, vector<2x512xf32> -> vector<2x512xf32>
    %122 = arith.addf %120, %121 : vector<2x512xf32>
    %123 = vector.extract_strided_slice %122 {offsets = [0, 0], sizes = [2, 128], strides = [1, 1]} : vector<2x512xf32> to vector<2x128xf32>
    %124 = arith.negf %123 : vector<2x128xf32>
    %125 = math.exp %124 : vector<2x128xf32>
    %cst_45 = arith.constant 1.000000e+00 : f32
    %126 = vector.broadcast %cst_45 : f32 to vector<2x128xf32>
    %127 = arith.addf %126, %125 : vector<2x128xf32>
    %128 = arith.divf %126, %127 : vector<2x128xf32>
    %129 = vector.extract_strided_slice %122 {offsets = [0, 128], sizes = [2, 128], strides = [1, 1]} : vector<2x512xf32> to vector<2x128xf32>
    %130 = arith.negf %129 : vector<2x128xf32>
    %131 = math.exp %130 : vector<2x128xf32>
    %cst_46 = arith.constant 1.000000e+00 : f32
    %132 = vector.broadcast %cst_46 : f32 to vector<2x128xf32>
    %133 = arith.addf %132, %131 : vector<2x128xf32>
    %134 = arith.divf %132, %133 : vector<2x128xf32>
    %135 = vector.extract_strided_slice %122 {offsets = [0, 256], sizes = [2, 128], strides = [1, 1]} : vector<2x512xf32> to vector<2x128xf32>
    %136 = math.tanh %135 : vector<2x128xf32>
    %137 = vector.extract_strided_slice %122 {offsets = [0, 384], sizes = [2, 128], strides = [1, 1]} : vector<2x512xf32> to vector<2x128xf32>
    %138 = arith.negf %137 : vector<2x128xf32>
    %139 = math.exp %138 : vector<2x128xf32>
    %cst_47 = arith.constant 1.000000e+00 : f32
    %140 = vector.broadcast %cst_47 : f32 to vector<2x128xf32>
    %141 = arith.addf %140, %139 : vector<2x128xf32>
    %142 = arith.divf %140, %141 : vector<2x128xf32>
    %143 = arith.mulf %134, %112 : vector<2x128xf32>
    %144 = arith.mulf %128, %136 : vector<2x128xf32>
    %145 = arith.addf %143, %144 : vector<2x128xf32>
    %146 = math.tanh %145 : vector<2x128xf32>
    %147 = arith.mulf %142, %146 : vector<2x128xf32>
    %148 = vector.shape_cast %147 : vector<2x128xf32> to vector<2x1x128xf32>
    %c0_48 = arith.constant 0 : index
    %149 = arith.index_cast %c3_i32 : i32 to index
    %c0_49 = arith.constant 0 : index
    %150 = vector.load %arg14[%c0_48, %149, %c0_49] : memref<2x8x128xf32, #tpu.memory_space<vmem>>, vector<2x1x128xf32>
    tpu.vector_store %arg14[%c0_48, %149, %c0_49], %148 {strides = array<i32>} : memref<2x8x128xf32, #tpu.memory_space<vmem>>, vector<2x1x128xf32>,
    %c4_i32 = arith.constant 4 : i32
    %c0_50 = arith.constant 0 : index
    %151 = arith.index_cast %c4_i32 : i32 to index
    %c0_51 = arith.constant 0 : index
    %152 = vector.load %arg13[%c0_50, %151, %c0_51] : memref<2x8x512xf32, #tpu.memory_space<vmem>>, vector<2x1x512xf32>
    %153 = vector.shape_cast %152 : vector<2x1x512xf32> to vector<2x512xf32>
    %cst_52 = arith.constant dense<0.000000e+00> : vector<2x512xf32>
    %154 = tpu.matmul %147, %16, %cst_52 {dimension_numbers = #tpu.dot_dimension_numbers<[1], [0], [0], [1], [0, 0, 1, 1], [], []>} : vector<2x128xf32>, vector<128x512xf32>, vector<2x512xf32> -> vector<2x512xf32>
    %155 = arith.addf %153, %154 : vector<2x512xf32>
    %156 = vector.extract_strided_slice %155 {offsets = [0, 0], sizes = [2, 128], strides = [1, 1]} : vector<2x512xf32> to vector<2x128xf32>
    %157 = arith.negf %156 : vector<2x128xf32>
    %158 = math.exp %157 : vector<2x128xf32>
    %cst_53 = arith.constant 1.000000e+00 : f32
    %159 = vector.broadcast %cst_53 : f32 to vector<2x128xf32>
    %160 = arith.addf %159, %158 : vector<2x128xf32>
    %161 = arith.divf %159, %160 : vector<2x128xf32>
    %162 = vector.extract_strided_slice %155 {offsets = [0, 128], sizes = [2, 128], strides = [1, 1]} : vector<2x512xf32> to vector<2x128xf32>
    %163 = arith.negf %162 : vector<2x128xf32>
    %164 = math.exp %163 : vector<2x128xf32>
    %cst_54 = arith.constant 1.000000e+00 : f32
    %165 = vector.broadcast %cst_54 : f32 to vector<2x128xf32>
    %166 = arith.addf %165, %164 : vector<2x128xf32>
    %167 = arith.divf %165, %166 : vector<2x128xf32>
    %168 = vector.extract_strided_slice %155 {offsets = [0, 256], sizes = [2, 128], strides = [1, 1]} : vector<2x512xf32> to vector<2x128xf32>
    %169 = math.tanh %168 : vector<2x128xf32>
    %170 = vector.extract_strided_slice %155 {offsets = [0, 384], sizes = [2, 128], strides = [1, 1]} : vector<2x512xf32> to vector<2x128xf32>
    %171 = arith.negf %170 : vector<2x128xf32>
    %172 = math.exp %171 : vector<2x128xf32>
    %cst_55 = arith.constant 1.000000e+00 : f32
    %173 = vector.broadcast %cst_55 : f32 to vector<2x128xf32>
    %174 = arith.addf %173, %172 : vector<2x128xf32>
    %175 = arith.divf %173, %174 : vector<2x128xf32>
    %176 = arith.mulf %167, %145 : vector<2x128xf32>
    %177 = arith.mulf %161, %169 : vector<2x128xf32>
    %178 = arith.addf %176, %177 : vector<2x128xf32>
    %179 = math.tanh %178 : vector<2x128xf32>
    %180 = arith.mulf %175, %179 : vector<2x128xf32>
    %181 = vector.shape_cast %180 : vector<2x128xf32> to vector<2x1x128xf32>
    %c0_56 = arith.constant 0 : index
    %182 = arith.index_cast %c4_i32 : i32 to index
    %c0_57 = arith.constant 0 : index
    %183 = vector.load %arg14[%c0_56, %182, %c0_57] : memref<2x8x128xf32, #tpu.memory_space<vmem>>, vector<2x1x128xf32>
    tpu.vector_store %arg14[%c0_56, %182, %c0_57], %181 {strides = array<i32>} : memref<2x8x128xf32, #tpu.memory_space<vmem>>, vector<2x1x128xf32>,
    %c5_i32 = arith.constant 5 : i32
    %c0_58 = arith.constant 0 : index
    %184 = arith.index_cast %c5_i32 : i32 to index
    %c0_59 = arith.constant 0 : index
    %185 = vector.load %arg13[%c0_58, %184, %c0_59] : memref<2x8x512xf32, #tpu.memory_space<vmem>>, vector<2x1x512xf32>
    %186 = vector.shape_cast %185 : vector<2x1x512xf32> to vector<2x512xf32>
    %cst_60 = arith.constant dense<0.000000e+00> : vector<2x512xf32>
    %187 = tpu.matmul %180, %16, %cst_60 {dimension_numbers = #tpu.dot_dimension_numbers<[1], [0], [0], [1], [0, 0, 1, 1], [], []>} : vector<2x128xf32>, vector<128x512xf32>, vector<2x512xf32> -> vector<2x512xf32>
    %188 = arith.addf %186, %187 : vector<2x512xf32>
    %189 = vector.extract_strided_slice %188 {offsets = [0, 0], sizes = [2, 128], strides = [1, 1]} : vector<2x512xf32> to vector<2x128xf32>
    %190 = arith.negf %189 : vector<2x128xf32>
    %191 = math.exp %190 : vector<2x128xf32>
    %cst_61 = arith.constant 1.000000e+00 : f32
    %192 = vector.broadcast %cst_61 : f32 to vector<2x128xf32>
    %193 = arith.addf %192, %191 : vector<2x128xf32>
    %194 = arith.divf %192, %193 : vector<2x128xf32>
    %195 = vector.extract_strided_slice %188 {offsets = [0, 128], sizes = [2, 128], strides = [1, 1]} : vector<2x512xf32> to vector<2x128xf32>
    %196 = arith.negf %195 : vector<2x128xf32>
    %197 = math.exp %196 : vector<2x128xf32>
    %cst_62 = arith.constant 1.000000e+00 : f32
    %198 = vector.broadcast %cst_62 : f32 to vector<2x128xf32>
    %199 = arith.addf %198, %197 : vector<2x128xf32>
    %200 = arith.divf %198, %199 : vector<2x128xf32>
    %201 = vector.extract_strided_slice %188 {offsets = [0, 256], sizes = [2, 128], strides = [1, 1]} : vector<2x512xf32> to vector<2x128xf32>
    %202 = math.tanh %201 : vector<2x128xf32>
    %203 = vector.extract_strided_slice %188 {offsets = [0, 384], sizes = [2, 128], strides = [1, 1]} : vector<2x512xf32> to vector<2x128xf32>
    %204 = arith.negf %203 : vector<2x128xf32>
    %205 = math.exp %204 : vector<2x128xf32>
    %cst_63 = arith.constant 1.000000e+00 : f32
    %206 = vector.broadcast %cst_63 : f32 to vector<2x128xf32>
    %207 = arith.addf %206, %205 : vector<2x128xf32>
    %208 = arith.divf %206, %207 : vector<2x128xf32>
    %209 = arith.mulf %200, %178 : vector<2x128xf32>
    %210 = arith.mulf %194, %202 : vector<2x128xf32>
    %211 = arith.addf %209, %210 : vector<2x128xf32>
    %212 = math.tanh %211 : vector<2x128xf32>
    %213 = arith.mulf %208, %212 : vector<2x128xf32>
    %214 = vector.shape_cast %213 : vector<2x128xf32> to vector<2x1x128xf32>
    %c0_64 = arith.constant 0 : index
    %215 = arith.index_cast %c5_i32 : i32 to index
    %c0_65 = arith.constant 0 : index
    %216 = vector.load %arg14[%c0_64, %215, %c0_65] : memref<2x8x128xf32, #tpu.memory_space<vmem>>, vector<2x1x128xf32>
    tpu.vector_store %arg14[%c0_64, %215, %c0_65], %214 {strides = array<i32>} : memref<2x8x128xf32, #tpu.memory_space<vmem>>, vector<2x1x128xf32>,
    %c6_i32 = arith.constant 6 : i32
    %c0_66 = arith.constant 0 : index
    %217 = arith.index_cast %c6_i32 : i32 to index
    %c0_67 = arith.constant 0 : index
    %218 = vector.load %arg13[%c0_66, %217, %c0_67] : memref<2x8x512xf32, #tpu.memory_space<vmem>>, vector<2x1x512xf32>
    %219 = vector.shape_cast %218 : vector<2x1x512xf32> to vector<2x512xf32>
    %cst_68 = arith.constant dense<0.000000e+00> : vector<2x512xf32>
    %220 = tpu.matmul %213, %16, %cst_68 {dimension_numbers = #tpu.dot_dimension_numbers<[1], [0], [0], [1], [0, 0, 1, 1], [], []>} : vector<2x128xf32>, vector<128x512xf32>, vector<2x512xf32> -> vector<2x512xf32>
    %221 = arith.addf %219, %220 : vector<2x512xf32>
    %222 = vector.extract_strided_slice %221 {offsets = [0, 0], sizes = [2, 128], strides = [1, 1]} : vector<2x512xf32> to vector<2x128xf32>
    %223 = arith.negf %222 : vector<2x128xf32>
    %224 = math.exp %223 : vector<2x128xf32>
    %cst_69 = arith.constant 1.000000e+00 : f32
    %225 = vector.broadcast %cst_69 : f32 to vector<2x128xf32>
    %226 = arith.addf %225, %224 : vector<2x128xf32>
    %227 = arith.divf %225, %226 : vector<2x128xf32>
    %228 = vector.extract_strided_slice %221 {offsets = [0, 128], sizes = [2, 128], strides = [1, 1]} : vector<2x512xf32> to vector<2x128xf32>
    %229 = arith.negf %228 : vector<2x128xf32>
    %230 = math.exp %229 : vector<2x128xf32>
    %cst_70 = arith.constant 1.000000e+00 : f32
    %231 = vector.broadcast %cst_70 : f32 to vector<2x128xf32>
    %232 = arith.addf %231, %230 : vector<2x128xf32>
    %233 = arith.divf %231, %232 : vector<2x128xf32>
    %234 = vector.extract_strided_slice %221 {offsets = [0, 256], sizes = [2, 128], strides = [1, 1]} : vector<2x512xf32> to vector<2x128xf32>
    %235 = math.tanh %234 : vector<2x128xf32>
    %236 = vector.extract_strided_slice %221 {offsets = [0, 384], sizes = [2, 128], strides = [1, 1]} : vector<2x512xf32> to vector<2x128xf32>
    %237 = arith.negf %236 : vector<2x128xf32>
    %238 = math.exp %237 : vector<2x128xf32>
    %cst_71 = arith.constant 1.000000e+00 : f32
    %239 = vector.broadcast %cst_71 : f32 to vector<2x128xf32>
    %240 = arith.addf %239, %238 : vector<2x128xf32>
    %241 = arith.divf %239, %240 : vector<2x128xf32>
    %242 = arith.mulf %233, %211 : vector<2x128xf32>
    %243 = arith.mulf %227, %235 : vector<2x128xf32>
    %244 = arith.addf %242, %243 : vector<2x128xf32>
    %245 = math.tanh %244 : vector<2x128xf32>
    %246 = arith.mulf %241, %245 : vector<2x128xf32>
    %247 = vector.shape_cast %246 : vector<2x128xf32> to vector<2x1x128xf32>
    %c0_72 = arith.constant 0 : index
    %248 = arith.index_cast %c6_i32 : i32 to index
    %c0_73 = arith.constant 0 : index
    %249 = vector.load %arg14[%c0_72, %248, %c0_73] : memref<2x8x128xf32, #tpu.memory_space<vmem>>, vector<2x1x128xf32>
    tpu.vector_store %arg14[%c0_72, %248, %c0_73], %247 {strides = array<i32>} : memref<2x8x128xf32, #tpu.memory_space<vmem>>, vector<2x1x128xf32>,
    %c7_i32 = arith.constant 7 : i32
    %c0_74 = arith.constant 0 : index
    %250 = arith.index_cast %c7_i32 : i32 to index
    %c0_75 = arith.constant 0 : index
    %251 = vector.load %arg13[%c0_74, %250, %c0_75] : memref<2x8x512xf32, #tpu.memory_space<vmem>>, vector<2x1x512xf32>
    %252 = vector.shape_cast %251 : vector<2x1x512xf32> to vector<2x512xf32>
    %cst_76 = arith.constant dense<0.000000e+00> : vector<2x512xf32>
    %253 = tpu.matmul %246, %16, %cst_76 {dimension_numbers = #tpu.dot_dimension_numbers<[1], [0], [0], [1], [0, 0, 1, 1], [], []>} : vector<2x128xf32>, vector<128x512xf32>, vector<2x512xf32> -> vector<2x512xf32>
    %254 = arith.addf %252, %253 : vector<2x512xf32>
    %255 = vector.extract_strided_slice %254 {offsets = [0, 0], sizes = [2, 128], strides = [1, 1]} : vector<2x512xf32> to vector<2x128xf32>
    %256 = arith.negf %255 : vector<2x128xf32>
    %257 = math.exp %256 : vector<2x128xf32>
    %cst_77 = arith.constant 1.000000e+00 : f32
    %258 = vector.broadcast %cst_77 : f32 to vector<2x128xf32>
    %259 = arith.addf %258, %257 : vector<2x128xf32>
    %260 = arith.divf %258, %259 : vector<2x128xf32>
    %261 = vector.extract_strided_slice %254 {offsets = [0, 128], sizes = [2, 128], strides = [1, 1]} : vector<2x512xf32> to vector<2x128xf32>
    %262 = arith.negf %261 : vector<2x128xf32>
    %263 = math.exp %262 : vector<2x128xf32>
    %cst_78 = arith.constant 1.000000e+00 : f32
    %264 = vector.broadcast %cst_78 : f32 to vector<2x128xf32>
    %265 = arith.addf %264, %263 : vector<2x128xf32>
    %266 = arith.divf %264, %265 : vector<2x128xf32>
    %267 = vector.extract_strided_slice %254 {offsets = [0, 256], sizes = [2, 128], strides = [1, 1]} : vector<2x512xf32> to vector<2x128xf32>
    %268 = math.tanh %267 : vector<2x128xf32>
    %269 = vector.extract_strided_slice %254 {offsets = [0, 384], sizes = [2, 128], strides = [1, 1]} : vector<2x512xf32> to vector<2x128xf32>
    %270 = arith.negf %269 : vector<2x128xf32>
    %271 = math.exp %270 : vector<2x128xf32>
    %cst_79 = arith.constant 1.000000e+00 : f32
    %272 = vector.broadcast %cst_79 : f32 to vector<2x128xf32>
    %273 = arith.addf %272, %271 : vector<2x128xf32>
    %274 = arith.divf %272, %273 : vector<2x128xf32>
    %275 = arith.mulf %266, %244 : vector<2x128xf32>
    %276 = arith.mulf %260, %268 : vector<2x128xf32>
    %277 = arith.addf %275, %276 : vector<2x128xf32>
    %278 = math.tanh %277 : vector<2x128xf32>
    %279 = arith.mulf %274, %278 : vector<2x128xf32>
    %280 = vector.shape_cast %279 : vector<2x128xf32> to vector<2x1x128xf32>
    %c0_80 = arith.constant 0 : index
    %281 = arith.index_cast %c7_i32 : i32 to index
    %c0_81 = arith.constant 0 : index
    %282 = vector.load %arg14[%c0_80, %281, %c0_81] : memref<2x8x128xf32, #tpu.memory_space<vmem>>, vector<2x1x128xf32>
    tpu.vector_store %arg14[%c0_80, %281, %c0_81], %280 {strides = array<i32>} : memref<2x8x128xf32, #tpu.memory_space<vmem>>, vector<2x1x128xf32>,
    %c8_i32 = arith.constant 8 : i32
    %c0_82 = arith.constant 0 : index
    %c0_83 = arith.constant 0 : index
    %283 = vector.load %arg11[%c0_82, %c0_83] : memref<2x128xf32, #tpu.memory_space<vmem>>, vector<2x128xf32>
    tpu.vector_store %arg11[%c0_82, %c0_83], %279 {strides = array<i32>} : memref<2x128xf32, #tpu.memory_space<vmem>>, vector<2x128xf32>,
    %c0_84 = arith.constant 0 : index
    %c0_85 = arith.constant 0 : index
    %284 = vector.load %arg12[%c0_84, %c0_85] : memref<2x128xf32, #tpu.memory_space<vmem>>, vector<2x128xf32>
    tpu.vector_store %arg12[%c0_84, %c0_85], %277 {strides = array<i32>} : memref<2x128xf32, #tpu.memory_space<vmem>>, vector<2x128xf32>,
    %c0_86 = arith.constant 0 : index
    %c0_87 = arith.constant 0 : index
    %c0_88 = arith.constant 0 : index
    %285 = vector.load %arg14[%c0_86, %c0_87, %c0_88] : memref<2x8x128xf32, #tpu.memory_space<vmem>>, vector<2x8x128xf32>
    %286 = vector.shape_cast %285 : vector<2x8x128xf32> to vector<16x128xf32>
    %c0_89 = arith.constant 0 : index
    %c0_90 = arith.constant 0 : index
    %287 = vector.load %arg8[%c0_89, %c0_90] : memref<128x256xf32, #tpu.memory_space<vmem>>, vector<128x256xf32>
    %cst_91 = arith.constant dense<0.000000e+00> : vector<16x256xf32>
    %288 = tpu.matmul %286, %287, %cst_91 {dimension_numbers = #tpu.dot_dimension_numbers<[1], [0], [0], [1], [0, 0, 1, 1], [], []>} : vector<16x128xf32>, vector<128x256xf32>, vector<16x256xf32> -> vector<16x256xf32>
    %c0_92 = arith.constant 0 : index
    %c0_93 = arith.constant 0 : index
    %289 = vector.load %arg9[%c0_92, %c0_93] : memref<1x256xf32, #tpu.memory_space<vmem>>, vector<1x256xf32>
    %290 = vector.broadcast %289 : vector<1x256xf32> to vector<16x256xf32>
    %291 = arith.addf %288, %290 : vector<16x256xf32>
    %c0_94 = arith.constant 0 : index
    %c0_95 = arith.constant 0 : index
    %292 = vector.load %arg10[%c0_94, %c0_95] : memref<16x256xf32, #tpu.memory_space<vmem>>, vector<16x256xf32>
    tpu.vector_store %arg10[%c0_94, %c0_95], %291 {strides = array<i32>} : memref<16x256xf32, #tpu.memory_space<vmem>>, vector<16x256xf32>,
    return
  }
  func.func @transform_0(%arg0: i32) -> (i32, i32, i32) {
    %c0_i32 = arith.constant 0 : i32
    %c0_i32_0 = arith.constant 0 : i32
    %c0_i32_1 = arith.constant 0 : i32
    return %arg0, %c0_i32, %c0_i32_0 : i32, i32, i32
  }
  func.func @transform_1(%arg0: i32) -> (i32, i32) {
    %c0_i32 = arith.constant 0 : i32
    %c0_i32_0 = arith.constant 0 : i32
    %c0_i32_1 = arith.constant 0 : i32
    return %c0_i32, %c0_i32_0 : i32, i32
  }
  func.func @transform_2(%arg0: i32) -> (i32, i32) {
    %c0_i32 = arith.constant 0 : i32
    %c0_i32_0 = arith.constant 0 : i32
    %c0_i32_1 = arith.constant 0 : i32
    return %c0_i32, %c0_i32_0 : i32, i32
  }
  func.func @transform_3(%arg0: i32) -> (i32, i32) {
    %c0_i32 = arith.constant 0 : i32
    %c0_i32_0 = arith.constant 0 : i32
    %c0_i32_1 = arith.constant 0 : i32
    return %c0_i32, %c0_i32_0 : i32, i32
  }
  func.func @transform_4(%arg0: i32) -> (i32, i32) {
    %c0_i32 = arith.constant 0 : i32
    %c0_i32_0 = arith.constant 0 : i32
    %c0_i32_1 = arith.constant 0 : i32
    return %c0_i32, %c0_i32_0 : i32, i32
  }
  func.func @transform_5(%arg0: i32) -> (i32, i32) {
    %c0_i32 = arith.constant 0 : i32
    %c0_i32_0 = arith.constant 0 : i32
    return %arg0, %c0_i32 : i32, i32
  }
  func.func @transform_6(%arg0: i32) -> (i32, i32) {
    %c0_i32 = arith.constant 0 : i32
    %c0_i32_0 = arith.constant 0 : i32
    return %arg0, %c0_i32 : i32, i32
  }
  func.func @transform_7(%arg0: i32) -> (i32, i32) {
    %c0_i32 = arith.constant 0 : i32
    %c0_i32_0 = arith.constant 0 : i32
    %c0_i32_1 = arith.constant 0 : i32
    return %c0_i32, %c0_i32_0 : i32, i32
  }
  func.func @transform_8(%arg0: i32) -> (i32, i32) {
    %c0_i32 = arith.constant 0 : i32
    %c0_i32_0 = arith.constant 0 : i32
    %c0_i32_1 = arith.constant 0 : i32
    return %c0_i32, %c0_i32_0 : i32, i32
  }
  func.func @transform_9(%arg0: i32) -> (i32, i32) {
    %c0_i32 = arith.constant 0 : i32
    %c0_i32_0 = arith.constant 0 : i32
    return %arg0, %c0_i32 : i32, i32
  }
  func.func @transform_10(%arg0: i32) -> (i32, i32) {
    %c0_i32 = arith.constant 0 : i32
    %c0_i32_0 = arith.constant 0 : i32
    return %arg0, %c0_i32 : i32, i32
  }
  func.func @transform_11(%arg0: i32) -> (i32, i32) {
    %c0_i32 = arith.constant 0 : i32
    %c0_i32_0 = arith.constant 0 : i32
    return %arg0, %c0_i32 : i32, i32
  }
}

</mosaic_0001>

<bundles_post_ra>
// kernel: tpu_custom_call.1
= control target key start
LH: loop header
LB: loop body
LE: loop exit
PB: predicated region body
PF: predicated region fallthrough
CT: control target
= control target key end

     0   :  { %17 = vsyncpa [#allocation5], 0  ;;  %s4737_s0 = inlined_call_operand.vmem [shape: s32[2,8,1], index: 0, kind: input, shape index: {}]   ;;  %s4738_s1 = inlined_call_operand.hbm [shape: f32[256,128], index: 1, kind: input, shape index: {}]   ;;  %s4739_s2 = inlined_call_operand.hbm [shape: f32[128,512], index: 2, kind: input, shape index: {}]   ;;  %s4740_s3 = inlined_call_operand.hbm [shape: f32[128,512], index: 3, kind: input, shape index: {}]   ;;  %s4741_s4 = inlined_call_operand.vmem [shape: f32[1,512], index: 4, kind: input, shape index: {}]   ;;  %s4742_s5 = inlined_call_operand.vmem [shape: f32[2,128], index: 5, kind: input, shape index: {}]   ;;  %s4743_s6 = inlined_call_operand.vmem [shape: f32[2,128], index: 6, kind: input, shape index: {}]   ;;  %s4744_s7 = inlined_call_operand.hbm [shape: f32[128,256], index: 7, kind: input, shape index: {}]   ;;  %s4745_s8 = inlined_call_operand.vmem [shape: f32[1,256], index: 8, kind: input, shape index: {}]   ;;  %s4746_s9 = inlined_call_operand.hbm [shape: f32[16,256], index: 9, kind: output, shape index: {0}]   ;;  %s4747_s10 = inlined_call_operand.hbm [shape: f32[2,128], index: 10, kind: output, shape index: {1}]   ;;  %s4748_s11 = inlined_call_operand.hbm [shape: f32[2,128], index: 11, kind: output, shape index: {2}]  }
   0x1   :  { %18 = vsyncpa [#allocation8], 0 }
   0x2   :  { %19 = vsyncpa [#allocation11], 0 }
   0x3   :  { %20 = vsyncpa [#allocation6], 0 }
   0x4   :  { %21 = vsyncpa [#allocation14], 0  ;;  %s4072_s17 = smov [#allocation7]   ;;  %s3908_s21 = scalar_lea.hbm %s4739_s2, 8192 }
   0x5   :  { %s41_s18 = sshll.u32 %s4072_s17, 4  ;;  %p3909_p0 = scmp.ne.s32.totalorder %s4739_s2, %s3908_s21  ;;  %s42_s18 = int_to_ptr.vmem [resolvable:$true] %s41_s18 }
   0x6   :  { %p3912_p1 = scmp.lt.u32.totalorder %s3908_s21, %s4739_s2 }
   0x8   :  { %p3914_p2 = pnand %p3912_p1, %p3909_p0 }
   0xa   :  { %3917 = shalt.err (!%p3914_p2)
}
   0xb   :  { %s3918_s26 = scalar_lea.vmem %s42_s18, 8192  ;;  %p3923_p4 = scmp.lt.s32.totalorder %s42_s18, %s42_s18 }
   0xc   :  { %p3919_p3 = scmp.ne.s32.totalorder %s42_s18, %s3918_s26  ;;  %p3924_p5 = scmp.lt.s32.totalorder %s3918_s26, %s3918_s26 }
   0xe   :  { %p3925_p6 = por %p3924_p5, %p3923_p4 }
  0x10   :  { %p3926_p7 = pnand %p3925_p6, %p3919_p3 }
  0x12   :  { %3929 = shalt.err (!%p3926_p7)
}
  0x13   :  { %s4073_s27 = smov 512   ;;  %s4074_s28 = smov 32  }
  0x14   :  { %47 = dma.hbm_to_vmem [thread:$0]  %s4739_s2, 8192, %s42_s18, [#allocation8], %s4073_s27, %s4073_s27, %s4074_s28  }
  0x15   :  { %s4075_s12 = smov [#allocation4]   ;;  %s3930_s16 = scalar_lea.hbm %s4738_s1, 4096 }
  0x16   :  { %s29_s13 = sshll.u32 %s4075_s12, 4  ;;  %p3931_p8 = scmp.ne.s32.totalorder %s4738_s1, %s3930_s16  ;;  %s30_s13 = int_to_ptr.vmem [resolvable:$true] %s29_s13 }
  0x17   :  { %p3934_p9 = scmp.lt.u32.totalorder %s3930_s16, %s4738_s1 }
  0x19   :  { %p3936_p10 = pnand %p3934_p9, %p3931_p8 }
  0x1b   :  { %3939 = shalt.err (!%p3936_p10)
}
  0x1c   :  { %s3940_s22 = scalar_lea.vmem %s30_s13, 4096  ;;  %p3945_p12 = scmp.lt.s32.totalorder %s30_s13, %s30_s13 }
  0x1d   :  { %p3941_p11 = scmp.ne.s32.totalorder %s30_s13, %s3940_s22  ;;  %p3946_p13 = scmp.lt.s32.totalorder %s3940_s22, %s3940_s22 }
  0x1f   :  { %p3947_p0 = por %p3946_p13, %p3945_p12 }
  0x21   :  { %p3948_p1 = pnand %p3947_p0, %p3941_p11 }
  0x23   :  { %3951 = shalt.err (!%p3948_p1)
}
  0x24   :  { %s4076_s2 = smov 128   ;;  %s4077_s18 = smov 8  }
  0x25   :  { %35 = dma.hbm_to_vmem [thread:$0]  %s4738_s1, 4096, %s30_s13, [#allocation5], %s4076_s2, %s4076_s2, %s4077_s18  }
  0x26   :  { %s4078_s25 = smov [#allocation9]   ;;  %s4079_s29 = smov [#allocation10]  }
  0x27   :  { %s53_s26 = sshll.u32 %s4078_s25, 4  ;;  %s71_s30 = sshll.u32 %s4079_s29, 4  ;;  %s54_s26 = int_to_ptr.vmem [resolvable:$true] %s53_s26  ;;  %s4176_s30 = int_to_ptr.vmem [resolvable:$true] %s71_s30 }
  0x28   :  { %s3952_s15 = scalar_lea.hbm %s4740_s3, 8192 }
  0x29   :  { %p3953_p2 = scmp.ne.s32.totalorder %s4740_s3, %s3952_s15  ;;  %p3956_p3 = scmp.lt.u32.totalorder %s3952_s15, %s4740_s3 }
  0x2b   :  { %p3958_p4 = pnand %p3956_p3, %p3953_p2 }
  0x2d   :  { %3961 = shalt.err (!%p3958_p4)
}
  0x2e   :  { %s3962_s1 = scalar_lea.vmem %s54_s26, 8192  ;;  %p3967_p6 = scmp.lt.s32.totalorder %s54_s26, %s54_s26 }
  0x2f   :  { %p3963_p5 = scmp.ne.s32.totalorder %s54_s26, %s3962_s1  ;;  %p3968_p7 = scmp.lt.s32.totalorder %s3962_s1, %s3962_s1 }
  0x31   :  { %p3969_p8 = por %p3968_p7, %p3967_p6 }
  0x33   :  { %p3970_p9 = pnand %p3969_p8, %p3963_p5 }
  0x35   :  { %3973 = shalt.err (!%p3970_p9)
}
  0x36   :  { %59 = dma.hbm_to_vmem [thread:$0]  %s4740_s3, 8192, %s54_s26, [#allocation8], %s4073_s27, %s4073_s27, %s4074_s28  }
  0x37   :  { %s3974_s18 = scalar_lea.hbm %s4744_s7, 4096 }
  0x38   :  { %p3975_p10 = scmp.ne.s32.totalorder %s4744_s7, %s3974_s18  ;;  %p3978_p11 = scmp.lt.u32.totalorder %s3974_s18, %s4744_s7 }
  0x3a   :  { %p3980_p12 = pnand %p3978_p11, %p3975_p10 }
  0x3c   :  { %3983 = shalt.err (!%p3980_p12)
}
  0x3d   :  { %s3984_s12 = scalar_lea.vmem %s4176_s30, 4096  ;;  %p3989_p0 = scmp.lt.s32.totalorder %s4176_s30, %s4176_s30 }
  0x3e   :  { %p3985_p13 = scmp.ne.s32.totalorder %s4176_s30, %s3984_s12  ;;  %p3990_p1 = scmp.lt.s32.totalorder %s3984_s12, %s3984_s12 }
  0x40   :  { %p3991_p2 = por %p3990_p1, %p3989_p0 }
  0x42   :  { %p3992_p3 = pnand %p3991_p2, %p3985_p13 }
  0x44   :  { %3995 = shalt.err (!%p3992_p3)
}
  0x45   :  { %s4080_s3 = smov 256   ;;  %s4081_s27 = smov 16  }
  0x46   :  { %77 = dma.hbm_to_vmem [thread:$0]  %s4744_s7, 4096, %s4176_s30, [#allocation11], %s4080_s3, %s4080_s3, %s4081_s27  }
  0x47   :  { %4062 = dma.done.wait [#allocation5], 4096  }
  0x48   :  { %4063 = vsyncadd [#allocation5], 4294963200 }
  0x49   :  { %4064 = dma.done.wait [#allocation8], 16384  }
  0x4a   :  { %4065 = vsyncadd [#allocation8], 4294950912 }
  0x4b   :  { %4066 = dma.done.wait [#allocation11], 4096  }
  0x4c   :  { %4067 = vsyncadd [#allocation11], 4294963200  ;;  %v4082_v0 = vmov 0   ;;  %v95_v1 = vld [vmem:[%s4737_s0] sm:$0xff]  ;;  %v96_v2 = vld [vmem:[%s4737_s0 + $0x8] sm:$0xff] }
  0x4d   :  { %3651 = vset.pattern.permute.xlu0 %v4082_v0  ;;  %v131_v3 = vld [vmem:[#allocation4 + $0x80] sm:$0xff]  ;;  %v132_v4 = vld [vmem:[#allocation4 + $0x88] sm:$0xff]  ;;  %v133_v9 = vld [vmem:[#allocation4 + $0x90] sm:$0xff] }
  0x4e   :  { %98 = vperm.xlu0 %3651, %v95_v1   ;;  %v115_v5 = vld [vmem:[#allocation4] sm:$0xff]  ;;  %v116_v6 = vld [vmem:[#allocation4 + $0x8] sm:$0xff]  ;;  %v2994_v7 = vpack.c.bf16 %v132_v4, %v131_v3  ;;  %v134_v10 = vld [vmem:[#allocation4 + $0x98] sm:$0xff] }
  0x4f   :  { %v2996_v8 = vpack.c.bf16 %v116_v6, %v115_v5  ;;  %v117_v11 = vld [vmem:[#allocation4 + $0x10] sm:$0xff]  ;;  %v2998_v12 = vpack.c.bf16 %v134_v10, %v133_v9  ;;  %v118_v13 = vld [vmem:[#allocation4 + $0x18] sm:$0xff]  ;;  %v135_v14 = vld [vmem:[#allocation4 + $0xa0] sm:$0xff] }
  0x50   :  { %v136_v15 = vld [vmem:[#allocation4 + $0xa8] sm:$0xff]  ;;  %2995 = vmatprep.subr.bf16.mxu0 %v2994_v7  ;;  %v3000_v16 = vpack.c.bf16 %v118_v13, %v117_v11  ;;  %v119_v18 = vld [vmem:[#allocation4 + $0x20] sm:$0xff]  ;;  %v137_v20 = vld [vmem:[#allocation4 + $0xb0] sm:$0xff] }
  0x51   :  { %2997 = vmatpush3.bf16.msra.mxu0 %v2996_v8  ;;  %v3002_v17 = vpack.c.bf16 %v136_v15, %v135_v14  ;;  %v120_v19 = vld [vmem:[#allocation4 + $0x28] sm:$0xff]  ;;  %v138_v21 = vld [vmem:[#allocation4 + $0xb8] sm:$0xff]  ;;  %v121_v24 = vld [vmem:[#allocation4 + $0x30] sm:$0xff] }
  0x52   :  { %101 = vperm.xlu0 %3651, %v96_v2   ;;  %2999 = vmatprep.subr.bf16.mxu0 %v2998_v12  ;;  %v3004_v22 = vpack.c.bf16 %v120_v19, %v119_v18  ;;  %v3006_v23 = vpack.c.bf16 %v138_v21, %v137_v20  ;;  %v122_v25 = vld [vmem:[#allocation4 + $0x38] sm:$0xff]  ;;  %v139_v26 = vld [vmem:[#allocation4 + $0xc0] sm:$0xff]  ;;  %v140_v27 = vld [vmem:[#allocation4 + $0xc8] sm:$0xff] }
  0x53   :  { %v223_v28 = vld [vmem:[#allocation7 + $0x8] sm:$0xff]  ;;  %v222_v31 = vld [vmem:[#allocation7] sm:$0xff]  ;;  %v3008_v32 = vpack.c.bf16 %v122_v25, %v121_v24  ;;  %v3010_v36 = vpack.c.bf16 %v140_v27, %v139_v26  ;;  %v141_v37 = vld [vmem:[#allocation4 + $0xd0] sm:$0xff] }
  0x54   :  { %v227_v29 = vld [vmem:[#allocation7 + $0x28] sm:$0xff]  ;;  %v123_v33 = vld [vmem:[#allocation4 + $0x40] sm:$0xff]  ;;  %v142_v41 = vld [vmem:[#allocation4 + $0xd8] sm:$0xff] }
  0x55   :  { %3001 = vmatpush3.bf16.msra.mxu0 %v3000_v16  ;;  %v3026_v30 = vpack.c.bf16 %v227_v29, %v223_v28  ;;  %v124_v34 = vld [vmem:[#allocation4 + $0x48] sm:$0xff]  ;;  %v226_v35 = vld [vmem:[#allocation7 + $0x20] sm:$0xff]  ;;  %v125_v48 = vld [vmem:[#allocation4 + $0x50] sm:$0xff]  ;;  %v3014_v51 = vpack.c.bf16 %v142_v41, %v141_v37 }
  0x56   :  { %3003 = vmatprep.subr.bf16.mxu0 %v3002_v17  ;;  %v3028_v38 = vpack.c.bf16 %v226_v35, %v222_v31  ;;  %v231_v39 = vld [vmem:[#allocation7 + $0x48] sm:$0xff]  ;;  %v230_v43 = vld [vmem:[#allocation7 + $0x40] sm:$0xff]  ;;  %v3012_v47 = vpack.c.bf16 %v124_v34, %v123_v33  ;;  %v126_v49 = vld [vmem:[#allocation4 + $0x58] sm:$0xff]  ;;  %v92_v35 = vlaneseq }
  0x57   :  { %3027 = vmatprep.subr.bf16.mxu1 %v3026_v30  ;;  %v235_v40 = vld [vmem:[#allocation7 + $0x68] sm:$0xff]  ;;  %v234_v44 = vld [vmem:[#allocation7 + $0x60] sm:$0xff]  ;;  %v3016_v60 = vpack.c.bf16 %v126_v49, %v125_v48  ;;  %v145_v5 = vld [vmem:[#allocation4 + $0xf0] sm:$0xff] }
  0x58   :  { %v3030_v42 = vpack.c.bf16 %v235_v40, %v231_v39  ;;  %3029 = vmatpush1.bf16.msra.mxu1 %v3028_v38  ;;  %v3032_v45 = vpack.c.bf16 %v234_v44, %v230_v43  ;;  %v239_v46 = vld [vmem:[#allocation7 + $0x88] sm:$0xff]  ;;  %v143_v52 = vld [vmem:[#allocation4 + $0xe0] sm:$0xff]  ;;  %v146_v6 = vld [vmem:[#allocation4 + $0xf8] sm:$0xff] }
  0x59   :  { %3005 = vmatpush3.bf16.msra.mxu0 %v3004_v22  ;;  %v243_v50 = vld [vmem:[#allocation7 + $0xa8] sm:$0xff]  ;;  %v238_v54 = vld [vmem:[#allocation7 + $0x80] sm:$0xff]  ;;  %v129_v9 = vld [vmem:[#allocation4 + $0x70] sm:$0xff]  ;;  %v3022_v13 = vpack.c.bf16 %v146_v6, %v145_v5 }
  0x5a   :  { %3007 = vmatprep.subr.bf16.mxu0 %v3006_v23  ;;  %3031 = vmatprep.subr.bf16.mxu1 %v3030_v42  ;;  %v3034_v53 = vpack.c.bf16 %v243_v50, %v239_v46  ;;  %v242_v55 = vld [vmem:[#allocation7 + $0xa0] sm:$0xff]  ;;  %v144_v56 = vld [vmem:[#allocation4 + $0xe8] sm:$0xff]  ;;  %v130_v14 = vld [vmem:[#allocation4 + $0x78] sm:$0xff] }
  0x5b   :  { %v247_v57 = vld [vmem:[#allocation7 + $0xc8] sm:$0xff]  ;;  %v3036_v59 = vpack.c.bf16 %v242_v55, %v238_v54  ;;  %v127_v61 = vld [vmem:[#allocation4 + $0x60] sm:$0xff]  ;;  %v3018_v1 = vpack.c.bf16 %v144_v56, %v143_v52  ;;  %v225_v17 = vld [vmem:[#allocation7 + $0x18] sm:$0xff]  ;;  %v3024_v20 = vpack.c.bf16 %v130_v14, %v129_v9 }
  0x5c   :  { %v251_v58 = vld [vmem:[#allocation7 + $0xe8] sm:$0xff]  ;;  %3033 = vmatpush1.bf16.msra.mxu1 %v3032_v45  ;;  %v246_v63 = vld [vmem:[#allocation7 + $0xc0] sm:$0xff]  ;;  %v229_v18 = vld [vmem:[#allocation7 + $0x38] sm:$0xff] }
  0x5d   :  { %3009 = vmatpush3.bf16.msra.mxu0 %v3008_v32  ;;  %3035 = vmatprep.subr.bf16.mxu1 %v3034_v53  ;;  %v3038_v62 = vpack.c.bf16 %v251_v58, %v247_v57  ;;  %v250_v0 = vld [vmem:[#allocation7 + $0xe0] sm:$0xff]  ;;  %v128_v2 = vld [vmem:[#allocation4 + $0x68] sm:$0xff]  ;;  %v3058_v24 = vpack.c.bf16 %v229_v18, %v225_v17  ;;  %v224_v38 = vld [vmem:[#allocation7 + $0x10] sm:$0xff] }
  0x5e   :  { %3011 = vmatprep.subr.bf16.mxu0 %v3010_v36  ;;  %v255_v3 = vld [vmem:[#allocation7 + $0x108] sm:$0xff]  ;;  %v3040_v7 = vpack.c.bf16 %v250_v0, %v246_v63  ;;  %v3020_v8 = vpack.c.bf16 %v128_v2, %v127_v61  ;;  %v254_v11 = vld [vmem:[#allocation7 + $0x100] sm:$0xff]  ;;  %v93_v36 = vand.u32 127, %v92_v35  ;;  %v228_v39 = vld [vmem:[#allocation7 + $0x30] sm:$0xff] }
  0x5f   :  { %v259_v4 = vld [vmem:[#allocation7 + $0x128] sm:$0xff]  ;;  %v258_v12 = vld [vmem:[#allocation7 + $0x120] sm:$0xff]  ;;  %v233_v40 = vld [vmem:[#allocation7 + $0x58] sm:$0xff]  ;;  %v3060_v43 = vpack.c.bf16 %v228_v39, %v224_v38 }
  0x60   :  { %3037 = vmatpush1.bf16.msra.mxu1 %v3036_v59  ;;  %v3042_v10 = vpack.c.bf16 %v259_v4, %v255_v3  ;;  %v263_v15 = vld [vmem:[#allocation7 + $0x148] sm:$0xff]  ;;  %v3044_v19 = vpack.c.bf16 %v258_v12, %v254_v11  ;;  %v262_v22 = vld [vmem:[#allocation7 + $0x140] sm:$0xff]  ;;  %v94_v37 = vadd.s32 128, %v93_v36  ;;  %v237_v41 = vld [vmem:[#allocation7 + $0x78] sm:$0xff] }
  0x61   :  { %3013 = vmatpush3.bf16.msra.mxu0 %v3012_v47  ;;  %3039 = vmatprep.subr.bf16.mxu1 %v3038_v62  ;;  %v267_v16 = vld [vmem:[#allocation7 + $0x168] sm:$0xff]  ;;  %v266_v23 = vld [vmem:[#allocation7 + $0x160] sm:$0xff]  ;;  %v3062_v44 = vpack.c.bf16 %v237_v41, %v233_v40  ;;  %v232_v45 = vld [vmem:[#allocation7 + $0x50] sm:$0xff]  ;;  %v4083_v47 = vmov 1.0  }
  0x62   :  { %3015 = vmatprep.subr.bf16.mxu0 %v3014_v51  ;;  %v3046_v21 = vpack.c.bf16 %v267_v16, %v263_v15  ;;  %v271_v25 = vld [vmem:[#allocation7 + $0x188] sm:$0xff]  ;;  %v3048_v27 = vpack.c.bf16 %v266_v23, %v262_v22  ;;  %v270_v29 = vld [vmem:[#allocation7 + $0x180] sm:$0xff]  ;;  %v236_v46 = vld [vmem:[#allocation7 + $0x70] sm:$0xff] }
  0x63   :  { %v275_v26 = vld [vmem:[#allocation7 + $0x1a8] sm:$0xff]  ;;  %v274_v30 = vld [vmem:[#allocation7 + $0x1a0] sm:$0xff]  ;;  %v241_v48 = vld [vmem:[#allocation7 + $0x98] sm:$0xff]  ;;  %v3064_v51 = vpack.c.bf16 %v236_v46, %v232_v45 }
  0x64   :  { %3041 = vmatpush1.bf16.msra.mxu1 %v3040_v7  ;;  %v3050_v28 = vpack.c.bf16 %v275_v26, %v271_v25  ;;  %v279_v31 = vld [vmem:[#allocation7 + $0x1c8] sm:$0xff]  ;;  %v3052_v33 = vpack.c.bf16 %v274_v30, %v270_v29  ;;  %v245_v49 = vld [vmem:[#allocation7 + $0xb8] sm:$0xff]  ;;  %v240_v53 = vld [vmem:[#allocation7 + $0x90] sm:$0xff] }
  0x65   :  { %3017 = vmatpush3.bf16.msra.mxu0 %v3016_v60  ;;  %3043 = vmatprep.subr.bf16.mxu1 %v3042_v10  ;;  %v283_v32 = vld [vmem:[#allocation7 + $0x1e8] sm:$0xff]  ;;  %v3066_v52 = vpack.c.bf16 %v245_v49, %v241_v48  ;;  %v244_v54 = vld [vmem:[#allocation7 + $0xb0] sm:$0xff]  ;;  %v249_v55 = vld [vmem:[#allocation7 + $0xd8] sm:$0xff] }
  0x66   :  { %3019 = vmatprep.subr.bf16.mxu0 %v3018_v1  ;;  %v3054_v34 = vpack.c.bf16 %v283_v32, %v279_v31  ;;  %v253_v56 = vld [vmem:[#allocation7 + $0xf8] sm:$0xff]  ;;  %v3068_v57 = vpack.c.bf16 %v244_v54, %v240_v53  ;;  %v248_v59 = vld [vmem:[#allocation7 + $0xd0] sm:$0xff]  ;;  %v471_v25 = vld [vmem:[#allocation9 + $0x8] sm:$0xff]  ;;  %v4084_v31 = vmov 0.0  }
  0x67   :  { %v3070_v58 = vpack.c.bf16 %v253_v56, %v249_v55  ;;  %v252_v60 = vld [vmem:[#allocation7 + $0xf0] sm:$0xff]  ;;  %v257_v61 = vld [vmem:[#allocation7 + $0x118] sm:$0xff]  ;;  %v475_v26 = vld [vmem:[#allocation9 + $0x28] sm:$0xff]  ;;  %372 = vmatprep.mubr.f32.mxu1 %v4084_v31 }
  0x68   :  { %3045 = vmatpush1.bf16.msra.mxu1 %v3044_v19  ;;  %v261_v62 = vld [vmem:[#allocation7 + $0x138] sm:$0xff]  ;;  %v3072_v63 = vpack.c.bf16 %v252_v60, %v248_v59  ;;  %v256_v1 = vld [vmem:[#allocation7 + $0x110] sm:$0xff]  ;;  %v278_v19 = vld [vmem:[#allocation7 + $0x1c0] sm:$0xff] }
  0x69   :  { %3021 = vmatpush3.bf16.msra.mxu0 %v3020_v8  ;;  %3047 = vmatprep.subr.bf16.mxu1 %v3046_v21  ;;  %v3074_v0 = vpack.c.bf16 %v261_v62, %v257_v61  ;;  %v260_v2 = vld [vmem:[#allocation7 + $0x130] sm:$0xff]  ;;  %v265_v3 = vld [vmem:[#allocation7 + $0x158] sm:$0xff]  ;;  %v470_v32 = vld [vmem:[#allocation9] sm:$0xff] }
  0x6a   :  { %3023 = vmatprep.subr.bf16.mxu0 %v3022_v13  ;;  %v269_v4 = vld [vmem:[#allocation7 + $0x178] sm:$0xff]  ;;  %v3076_v5 = vpack.c.bf16 %v260_v2, %v256_v1  ;;  %v264_v7 = vld [vmem:[#allocation7 + $0x150] sm:$0xff]  ;;  %v483_v39 = vld [vmem:[#allocation9 + $0x68] sm:$0xff] }
  0x6b   :  { %v3078_v6 = vpack.c.bf16 %v269_v4, %v265_v3  ;;  %v268_v8 = vld [vmem:[#allocation7 + $0x170] sm:$0xff]  ;;  %v273_v9 = vld [vmem:[#allocation7 + $0x198] sm:$0xff]  ;;  %v478_v45 = vld [vmem:[#allocation9 + $0x40] sm:$0xff] }
  0x6c   :  { %3049 = vmatpush1.bf16.msra.mxu1 %v3048_v27  ;;  %v277_v10 = vld [vmem:[#allocation7 + $0x1b8] sm:$0xff]  ;;  %v3080_v11 = vpack.c.bf16 %v268_v8, %v264_v7  ;;  %v272_v13 = vld [vmem:[#allocation7 + $0x190] sm:$0xff]  ;;  %v482_v46 = vld [vmem:[#allocation9 + $0x60] sm:$0xff] }
  0x6d   :  { %3025 = vmatpush3.bf16.msra.mxu0 %v3024_v20  ;;  %3051 = vmatprep.subr.bf16.mxu1 %v3050_v28  ;;  %v3082_v12 = vpack.c.bf16 %v277_v10, %v273_v9  ;;  %v276_v14 = vld [vmem:[#allocation7 + $0x1b0] sm:$0xff]  ;;  %v281_v15 = vld [vmem:[#allocation7 + $0x1d8] sm:$0xff]  ;;  %v282_v20 = vld [vmem:[#allocation7 + $0x1e0] sm:$0xff]  ;;  %v4220_v28 = vpack.c.bf16 %v475_v26, %v471_v25 }
  0x6e   :  { %3059 = vmatprep.subr.bf16.mxu0 %v3058_v24  ;;  %v285_v16 = vld [vmem:[#allocation7 + $0x1f8] sm:$0xff]  ;;  %v3084_v17 = vpack.c.bf16 %v276_v14, %v272_v13  ;;  %v280_v21 = vld [vmem:[#allocation7 + $0x1d0] sm:$0xff]  ;;  %v3056_v22 = vpack.c.bf16 %v282_v20, %v278_v19  ;;  %v491_v53 = vld [vmem:[#allocation9 + $0xa8] sm:$0xff] }
  0x6f   :  { %v3086_v18 = vpack.c.bf16 %v285_v16, %v281_v15  ;;  %v284_v23 = vld [vmem:[#allocation7 + $0x1f0] sm:$0xff]  ;;  %v473_v27 = vld [vmem:[#allocation9 + $0x18] sm:$0xff]  ;;  %v486_v60 = vld [vmem:[#allocation9 + $0x80] sm:$0xff] }
  0x70   :  { %3053 = vmatpush1.bf16.msra.mxu1 %v3052_v33  ;;  %v3088_v24 = vpack.c.bf16 %v284_v23, %v280_v21  ;;  %v477_v29 = vld [vmem:[#allocation9 + $0x38] sm:$0xff]  ;;  %v474_v33 = vld [vmem:[#allocation9 + $0x20] sm:$0xff]  ;;  %v480_v48 = vld [vmem:[#allocation9 + $0x50] sm:$0xff] }
  0x71   :  { %3055 = vmatprep.subr.bf16.mxu1 %v3054_v34  ;;  %v4222_v30 = vpack.c.bf16 %v477_v29, %v473_v27  ;;  %v472_v34 = vld [vmem:[#allocation9 + $0x10] sm:$0xff]  ;;  %v481_v40 = vld [vmem:[#allocation9 + $0x58] sm:$0xff]  ;;  %v490_v61 = vld [vmem:[#allocation9 + $0xa0] sm:$0xff] }
  0x72   :  { %v485_v41 = vld [vmem:[#allocation9 + $0x78] sm:$0xff]  ;;  %v484_v49 = vld [vmem:[#allocation9 + $0x70] sm:$0xff]  ;;  %v495_v3 = vld [vmem:[#allocation9 + $0xc8] sm:$0xff]  ;;  %v4252_v7 = vpack.c.bf16 %v490_v61, %v486_v60 }
  0x73   :  { %v489_v54 = vld [vmem:[#allocation9 + $0x98] sm:$0xff]  ;;  %v4240_v59 = vpack.c.bf16 %v484_v49, %v480_v48  ;;  %v488_v1 = vld [vmem:[#allocation9 + $0x90] sm:$0xff]  ;;  %v499_v4 = vld [vmem:[#allocation9 + $0xe8] sm:$0xff] }
  0x74   :  { %3057 = vmatpush1.bf16.msra.mxu1 %v3056_v22  ;;  %v493_v55 = vld [vmem:[#allocation9 + $0xb8] sm:$0xff]  ;;  %v492_v2 = vld [vmem:[#allocation9 + $0xb0] sm:$0xff]  ;;  %v494_v9 = vld [vmem:[#allocation9 + $0xc0] sm:$0xff] }
  0x75   :  { %3091 = vmatprep.subr.bf16.mxu1 %v4220_v28  ;;  %v4254_v8 = vpack.c.bf16 %v492_v2, %v488_v1  ;;  %v498_v10 = vld [vmem:[#allocation9 + $0xe0] sm:$0xff]  ;;  %v496_v13 = vld [vmem:[#allocation9 + $0xd0] sm:$0xff]  ;;  %v503_v15 = vld [vmem:[#allocation9 + $0x108] sm:$0xff] }
  0x76   :  { %v500_v14 = vld [vmem:[#allocation9 + $0xf0] sm:$0xff]  ;;  %v507_v16 = vld [vmem:[#allocation9 + $0x128] sm:$0xff]  ;;  %v4266_v19 = vpack.c.bf16 %v498_v10, %v494_v9  ;;  %v502_v21 = vld [vmem:[#allocation9 + $0x100] sm:$0xff] }
  0x77   :  { %v4268_v20 = vpack.c.bf16 %v500_v14, %v496_v13  ;;  %v506_v22 = vld [vmem:[#allocation9 + $0x120] sm:$0xff]  ;;  %v4272_v23 = vpack.c.bf16 %v507_v16, %v503_v15  ;;  %v504_v25 = vld [vmem:[#allocation9 + $0x110] sm:$0xff]  ;;  %v511_v27 = vld [vmem:[#allocation9 + $0x148] sm:$0xff] }
  0x78   :  { %v508_v26 = vld [vmem:[#allocation9 + $0x130] sm:$0xff]  ;;  %v515_v29 = vld [vmem:[#allocation9 + $0x168] sm:$0xff]  ;;  %v525_v48 = vld [vmem:[#allocation9 + $0x1b8] sm:$0xff] }
  0x79   :  { %v524_v60 = vld [vmem:[#allocation9 + $0x1b0] sm:$0xff]  ;;  %v527_v61 = vld [vmem:[#allocation9 + $0x1c8] sm:$0xff]  ;;  %v529_v1 = vld [vmem:[#allocation9 + $0x1d8] sm:$0xff] }
  0x7a   :  { %v533_v2 = vld [vmem:[#allocation9 + $0x1f8] sm:$0xff]  ;;  %v530_v10 = vld [vmem:[#allocation9 + $0x1e0] sm:$0xff]  ;;  %v528_v13 = vld [vmem:[#allocation9 + $0x1d0] sm:$0xff] }
  0x7b   :  { %v4310_v9 = vpack.c.bf16 %v533_v2, %v529_v1  ;;  %v532_v14 = vld [vmem:[#allocation9 + $0x1f0] sm:$0xff] }
  0x7c   :  { %v4316_v16 = vpack.c.bf16 %v532_v14, %v528_v13 }
  0xcd   :  { %v99_v42 = vpop.permute.xlu0 %98 }
  0xce   :  { %vm103_vm0 = vcmp.eq.s32.totalorder %v93_v36, %v99_v42  ;;  %vm104_vm1 = vcmp.eq.s32.totalorder %v94_v37, %v99_v42 }
  0xcf   :  { %2901 = vmatprep.mubr.msk.f32.mxu0 %vm104_vm1, %v4083_v47 }
  0xd0   :  { %2902 = vmatmul.mubr.msk.f32.vlgmr.msra.gmra.mrb[0].mxu0 %vm103_vm0, %v4083_v47 }
  0xd1   :  { %v102_v50 = vpop.permute.xlu0 %101  ;;  %3061 = vmatpush1.bf16.msra.mxu0 %v3060_v43  ;;  %v4228_v43 = vpack.c.bf16 %v474_v33, %v470_v32  ;;  %v513_v32 = vld [vmem:[#allocation9 + $0x158] sm:$0xff] }
  0xd2   :  { %vm105_vm2 = vcmp.eq.s32.totalorder %v93_v36, %v102_v50  ;;  %vm106_vm3 = vcmp.eq.s32.totalorder %v94_v37, %v102_v50  ;;  %3063 = vmatprep.subr.bf16.mxu0 %v3062_v44  ;;  %v476_v36 = vld [vmem:[#allocation9 + $0x30] sm:$0xff]  ;;  %v479_v37 = vld [vmem:[#allocation9 + $0x48] sm:$0xff]  ;;  %v517_v33 = vld [vmem:[#allocation9 + $0x178] sm:$0xff] }
  0xd3   :  { %2903 = vmatprep.mubr.msk.f32.mxu0 %vm106_vm3, %v4083_v47  ;;  %v4230_v44 = vpack.c.bf16 %v476_v36, %v472_v34  ;;  %v487_v50 = vld [vmem:[#allocation9 + $0x88] sm:$0xff]  ;;  %v4278_v34 = vpack.c.bf16 %v506_v22, %v502_v21  ;;  %v4280_v36 = vpack.c.bf16 %v508_v26, %v504_v25  ;;  %v286_v25 = vld [vmem:[%s4741_s4] sm:$0xf] }
  0xd4   :  { %2904 = vmatmul.mubr.msk.f32.gmra.mrb[2].mxu0 %vm105_vm2, %v4083_v47 }
  0xd5   :  { %3065 = vmatpush1.bf16.msra.mxu0 %v3064_v51  ;;  %449 = vmatprep.mubr.f32.mxu0 %v4084_v31  ;;  %v4232_v51 = vpack.c.bf16 %v483_v39, %v479_v37  ;;  %v510_v37 = vld [vmem:[#allocation9 + $0x140] sm:$0xff]  ;;  %v4284_v39 = vpack.c.bf16 %v515_v29, %v511_v27 }
  0xd6   :  { %3067 = vmatprep.subr.bf16.mxu0 %v3066_v52  ;;  %v4234_v52 = vpack.c.bf16 %v485_v41, %v481_v40  ;;  %v4286_v40 = vpack.c.bf16 %v517_v33, %v513_v32  ;;  %v512_v41 = vld [vmem:[#allocation9 + $0x150] sm:$0xff] }
  0xd9   :  { %3069 = vmatpush1.bf16.msra.mxu0 %v3068_v57 }
  0xda   :  { %3071 = vmatprep.subr.bf16.mxu0 %v3070_v58  ;;  %v4238_v58 = vpack.c.bf16 %v482_v46, %v478_v45  ;;  %v519_v45 = vld [vmem:[#allocation9 + $0x188] sm:$0xff] }
  0xdb   :  { %v523_v46 = vld [vmem:[#allocation9 + $0x1a8] sm:$0xff] }
  0xdd   :  { %3073 = vmatpush1.bf16.msra.mxu0 %v3072_v63  ;;  %v4244_v63 = vpack.c.bf16 %v491_v53, %v487_v50  ;;  %v518_v53 = vld [vmem:[#allocation9 + $0x180] sm:$0xff] }
  0xde   :  { %3075 = vmatprep.subr.bf16.mxu0 %v3074_v0  ;;  %v4246_v0 = vpack.c.bf16 %v493_v55, %v489_v54  ;;  %v522_v54 = vld [vmem:[#allocation9 + $0x1a0] sm:$0xff]  ;;  %v4296_v55 = vpack.c.bf16 %v523_v46, %v519_v45 }
  0xe1   :  { %3077 = vmatpush1.bf16.msra.mxu0 %v3076_v5  ;;  %v497_v5 = vld [vmem:[#allocation9 + $0xd8] sm:$0xff] }
  0xe2   :  { %3079 = vmatprep.subr.bf16.mxu0 %v3078_v6  ;;  %v501_v6 = vld [vmem:[#allocation9 + $0xf8] sm:$0xff] }
  0xe5   :  { %3081 = vmatpush1.bf16.msra.mxu0 %v3080_v11  ;;  %v4258_v11 = vpack.c.bf16 %v499_v4, %v495_v3  ;;  %v4302_v3 = vpack.c.bf16 %v522_v54, %v518_v53 }
  0xe6   :  { %3083 = vmatprep.subr.bf16.mxu0 %v3082_v12  ;;  %v4260_v12 = vpack.c.bf16 %v501_v6, %v497_v5  ;;  %v526_v5 = vld [vmem:[#allocation9 + $0x1c0] sm:$0xff] }
  0xe7   :  { %v4314_v15 = vpack.c.bf16 %v530_v10, %v526_v5  ;;  %v4085_v5 = vmov 1966171168  }
  0xe8   :  { %v688_v10 = vunpack.c.l.s4 %v4085_v5 }
  0xe9   :  { %3085 = vmatpush1.bf16.msra.mxu0 %v3084_v17  ;;  %v505_v17 = vld [vmem:[#allocation9 + $0x118] sm:$0xff] }
  0xea   :  { %3087 = vmatprep.subr.bf16.mxu0 %v3086_v18  ;;  %v509_v18 = vld [vmem:[#allocation9 + $0x138] sm:$0xff]  ;;  %v689_v13 = vunpack.c.0.s8 %v688_v10 }
  0xed   :  { %3089 = vmatpush1.bf16.msra.mxu0 %v3088_v24  ;;  %v4274_v24 = vpack.c.bf16 %v509_v18, %v505_v17  ;;  %v534_v17 = vld [vmem:[%s4742_s5] sm:$0x3]  ;;  %v4362_v18 = vshrl.u32 %v92_v35, 7 }
  0xee   :  { %3123 = vmatprep.subr.bf16.mxu0 %v4222_v30 }
  0xef   :  { %v290_v21 = vsub.s32 0, %v4362_v18  ;;  %v298_v22 = vsub.s32 2, %v4362_v18  ;;  %v294_v26 = vsub.s32 1, %v4362_v18  ;;  %v302_v27 = vsub.s32 3, %v4362_v18 }
  0xf0   :  { %v4376_v14 = vsub.s32 %v689_v13, %v4362_v18 }
  0xf1   :  { %v291_v29 = vrot.slane %v286_v25, %v290_v21  ;;  %v299_v32 = vrot.slane %v286_v25, %v298_v22  ;;  %v295_v35 = vrot.slane %v286_v25, %v294_v26  ;;  %v303_v33 = vrot.slane %v286_v25, %v302_v27 }
 0x1a3   :  { %v2988_v38 = vpop.f32.mrb[0].mxu0 }
 0x1a4   :  { %v2989_v42 = vpop.f32.mrb[1].mxu0 }
 0x1a5   :  { %v2990_v47 = vadd.f32 %v2989_v42, %v2988_v38  ;;  %v514_v38 = vld [vmem:[#allocation9 + $0x160] sm:$0xff]  ;;  %v516_v42 = vld [vmem:[#allocation9 + $0x170] sm:$0xff] }
 0x1a6   :  { %v4290_v49 = vpack.c.bf16 %v514_v38, %v510_v37  ;;  %v4292_v50 = vpack.c.bf16 %v516_v42, %v512_v41 }
 0x1a7   :  { %v2991_v56 = vpop.f32.mrb[2].mxu0  ;;  %373 = vmatmul.mubr.f32.vlgmr.msra.gmra.mrb[0].mxu1 %v2990_v47  ;;  %450 = vmatmul.mubr.f32.vlgmr.msra.gmra.mrb[4].mxu0 %v2990_v47  ;;  %v521_v47 = vld [vmem:[#allocation9 + $0x198] sm:$0xff] }
 0x1a8   :  { %3093 = vmatpush1.bf16.msra.mxu1 %v4228_v43  ;;  %3125 = vmatpush1.bf16.msra.mxu0 %v4230_v44  ;;  %v2992_v57 = vpop.f32.mrb[3].mxu0 }
 0x1a9   :  { %v2993_v62 = vadd.f32 %v2992_v57, %v2991_v56  ;;  %378 = vmatprep.mubr.f32.mxu1 %v4084_v31  ;;  %455 = vmatprep.mubr.f32.mxu0 %v4084_v31  ;;  %v4298_v56 = vpack.c.bf16 %v525_v48, %v521_v47  ;;  %v520_v57 = vld [vmem:[#allocation9 + $0x190] sm:$0xff] }
 0x1aa   :  { %3095 = vmatprep.subr.bf16.mxu1 %v4232_v51  ;;  %3127 = vmatprep.subr.bf16.mxu0 %v4234_v52  ;;  %v4304_v4 = vpack.c.bf16 %v524_v60, %v520_v57 }
 0x1ab   :  { %379 = vmatmul.mubr.f32.gmra.mrb[2].mxu1 %v2993_v62  ;;  %456 = vmatmul.mubr.f32.gmra.mrb[6].mxu0 %v2993_v62  ;;  %v531_v62 = vld [vmem:[#allocation9 + $0x1e8] sm:$0xff] }
 0x1ac   :  { %3097 = vmatpush1.bf16.msra.mxu1 %v4238_v58  ;;  %3129 = vmatpush1.bf16.msra.mxu0 %v4240_v59  ;;  %v4308_v6 = vpack.c.bf16 %v531_v62, %v527_v61 }
 0x1ad   :  { %3099 = vmatprep.subr.bf16.mxu1 %v4244_v63  ;;  %3131 = vmatprep.subr.bf16.mxu0 %v4246_v0 }
 0x1ae   :  { %603 = vmatprep.mubr.f32.mxu1 %v4084_v31  ;;  %674 = vmatprep.mubr.f32.mxu0 %v4084_v31 }
 0x1b0   :  { %3101 = vmatpush1.bf16.msra.mxu1 %v4252_v7  ;;  %3133 = vmatpush1.bf16.msra.mxu0 %v4254_v8 }
 0x1b1   :  { %3103 = vmatprep.subr.bf16.mxu1 %v4258_v11  ;;  %3135 = vmatprep.subr.bf16.mxu0 %v4260_v12 }
 0x1b4   :  { %3105 = vmatpush1.bf16.msra.mxu1 %v4266_v19  ;;  %3137 = vmatpush1.bf16.msra.mxu0 %v4268_v20 }
 0x1b5   :  { %3107 = vmatprep.subr.bf16.mxu1 %v4272_v23  ;;  %3139 = vmatprep.subr.bf16.mxu0 %v4274_v24 }
 0x1b8   :  { %3109 = vmatpush1.bf16.msra.mxu1 %v4278_v34  ;;  %3141 = vmatpush1.bf16.msra.mxu0 %v4280_v36 }
 0x1b9   :  { %3111 = vmatprep.subr.bf16.mxu1 %v4284_v39  ;;  %3143 = vmatprep.subr.bf16.mxu0 %v4286_v40 }
 0x1bc   :  { %3113 = vmatpush1.bf16.msra.mxu1 %v4290_v49  ;;  %3145 = vmatpush1.bf16.msra.mxu0 %v4292_v50 }
 0x1bd   :  { %3115 = vmatprep.subr.bf16.mxu1 %v4296_v55  ;;  %3147 = vmatprep.subr.bf16.mxu0 %v4298_v56 }
 0x1c0   :  { %3117 = vmatpush1.bf16.msra.mxu1 %v4302_v3  ;;  %3149 = vmatpush1.bf16.msra.mxu0 %v4304_v4 }
 0x1c1   :  { %3119 = vmatprep.subr.bf16.mxu1 %v4308_v6  ;;  %3151 = vmatprep.subr.bf16.mxu0 %v4310_v9 }
 0x1c4   :  { %3121 = vmatpush1.bf16.msra.mxu1 %v4314_v15  ;;  %3153 = vmatpush1.bf16.msra.mxu0 %v4316_v16 }
 0x1c5   :  { %3155 = vmatprep.subr.bf16.mxu1 %v4220_v28  ;;  %3187 = vmatprep.subr.bf16.mxu0 %v4222_v30 }
 0x1c7   :  { %604 = vmatmul.mubr.f32.vlgmr.msra.gmra.mrb[4].mxu1 %v534_v17  ;;  %675 = vmatmul.mubr.f32.vlgmr.msra.gmra.mrb[8].mxu0 %v534_v17 }
 0x1c8   :  { %3157 = vmatpush1.bf16.msra.mxu1 %v4228_v43  ;;  %3189 = vmatpush1.bf16.msra.mxu0 %v4230_v44 }
 0x1c9   :  { %3159 = vmatprep.subr.bf16.mxu1 %v4232_v51  ;;  %3191 = vmatprep.subr.bf16.mxu0 %v4234_v52 }
 0x1ca   :  { %896 = vmatprep.mubr.f32.mxu1 %v4084_v31  ;;  %967 = vmatprep.mubr.f32.mxu0 %v4084_v31 }
 0x1cc   :  { %3161 = vmatpush1.bf16.msra.mxu1 %v4238_v58  ;;  %3193 = vmatpush1.bf16.msra.mxu0 %v4240_v59 }
 0x1cd   :  { %3163 = vmatprep.subr.bf16.mxu1 %v4244_v63  ;;  %3195 = vmatprep.subr.bf16.mxu0 %v4246_v0 }
 0x1d0   :  { %3165 = vmatpush1.bf16.msra.mxu1 %v4252_v7  ;;  %3197 = vmatpush1.bf16.msra.mxu0 %v4254_v8 }
 0x1d1   :  { %3167 = vmatprep.subr.bf16.mxu1 %v4258_v11  ;;  %3199 = vmatprep.subr.bf16.mxu0 %v4260_v12 }
 0x1d4   :  { %3169 = vmatpush1.bf16.msra.mxu1 %v4266_v19  ;;  %3201 = vmatpush1.bf16.msra.mxu0 %v4268_v20 }
 0x1d5   :  { %3171 = vmatprep.subr.bf16.mxu1 %v4272_v23  ;;  %3203 = vmatprep.subr.bf16.mxu0 %v4274_v24 }
 0x1d8   :  { %3173 = vmatpush1.bf16.msra.mxu1 %v4278_v34  ;;  %3205 = vmatpush1.bf16.msra.mxu0 %v4280_v36 }
 0x1d9   :  { %3175 = vmatprep.subr.bf16.mxu1 %v4284_v39  ;;  %3207 = vmatprep.subr.bf16.mxu0 %v4286_v40 }
 0x1dc   :  { %3177 = vmatpush1.bf16.msra.mxu1 %v4290_v49  ;;  %3209 = vmatpush1.bf16.msra.mxu0 %v4292_v50 }
 0x1dd   :  { %3179 = vmatprep.subr.bf16.mxu1 %v4296_v55  ;;  %3211 = vmatprep.subr.bf16.mxu0 %v4298_v56 }
 0x1e0   :  { %3181 = vmatpush1.bf16.msra.mxu1 %v4302_v3  ;;  %3213 = vmatpush1.bf16.msra.mxu0 %v4304_v4 }
 0x1e1   :  { %3183 = vmatprep.subr.bf16.mxu1 %v4308_v6  ;;  %3215 = vmatprep.subr.bf16.mxu0 %v4310_v9 }
 0x1e4   :  { %3185 = vmatpush1.bf16.msra.mxu1 %v4314_v15  ;;  %3217 = vmatpush1.bf16.msra.mxu0 %v4316_v16 }
 0x1e5   :  { %3219 = vmatprep.subr.bf16.mxu1 %v4220_v28  ;;  %3251 = vmatprep.subr.bf16.mxu0 %v4222_v30 }
 0x27a   :  { %v374_v37 = vpop.f32.mrb[0].mxu1  ;;  %v451_v38 = vpop.f32.mrb[4].mxu0 }
 0x27b   :  { %v375_v41 = vadd.f32 %v374_v37, %v291_v29  ;;  %v452_v42 = vadd.f32 %v451_v38, %v299_v32  ;;  %v376_v45 = vpop.f32.mrb[1].mxu1  ;;  %v453_v46 = vpop.f32.mrb[5].mxu0 }
 0x27c   :  { %v377_v47 = vadd.f32 %v376_v45, %v295_v35  ;;  %v454_v48 = vadd.f32 %v453_v46, %v303_v33 }
 0x27d   :  { %462 = vst [vmem:[#allocation2] sm:$0xff] %v375_v41  ;;  %464 = vst [vmem:[#allocation2 + $0x10] sm:$0xff] %v452_v42 }
 0x27e   :  { %463 = vst [vmem:[#allocation2 + $0x8] sm:$0xff] %v377_v47  ;;  %465 = vst [vmem:[#allocation2 + $0x18] sm:$0xff] %v454_v48  ;;  %v380_v53 = vpop.f32.mrb[2].mxu1  ;;  %v457_v54 = vpop.f32.mrb[6].mxu0 }
 0x27f   :  { %v381_v57 = vadd.f32 %v380_v53, %v291_v29  ;;  %v458_v60 = vadd.f32 %v457_v54, %v299_v32  ;;  %v382_v61 = vpop.f32.mrb[3].mxu1  ;;  %v459_v62 = vpop.f32.mrb[7].mxu0 }
 0x280   :  { %v383_v1 = vadd.f32 %v382_v61, %v295_v35  ;;  %v460_v2 = vadd.f32 %v459_v62, %v303_v33 }
 0x281   :  { %466 = vst [vmem:[#allocation2 + $0x20] sm:$0xff] %v381_v57  ;;  %468 = vst [vmem:[#allocation2 + $0x30] sm:$0xff] %v458_v60 }
 0x282   :  { %467 = vst [vmem:[#allocation2 + $0x28] sm:$0xff] %v383_v1  ;;  %469 = vst [vmem:[#allocation2 + $0x38] sm:$0xff] %v460_v2 }
 0x285   :  { %v536_v45 = vld [vmem:[#allocation2] ss:$8 sm:$0xf] }
 0x289   :  { %v538_v46 = vld [vmem:[#allocation2 + $0x20] ss:$8 sm:$0xf] }
 0x29a   :  { %v605_v17 = vpop.f32.mrb[4].mxu1  ;;  %v676_v22 = vpop.f32.mrb[8].mxu0 }
 0x29b   :  { %v607_v25 = vpop.f32.mrb[5].mxu1  ;;  %v678_v27 = vpop.f32.mrb[9].mxu0 }
 0x29c   :  { %v685_v29 = vcombine.low %v605_v17, %v607_v25  ;;  %v686_v32 = vcombine.low %v676_v22, %v678_v27 }
 0x29e   :  { %v693_v37 = vrot.slane %v685_v29, %v4376_v14  ;;  %v700_v35 = vrot.slane %v686_v32, %v4376_v14 }
 0x2a0   :  { %v701_v33 = vcombine.low %v693_v37, %v700_v35  ;;  %v702_v38 = vcombine.high %v693_v37, %v700_v35 }
 0x2a2   :  { %v709_v41 = vrot.slane %v701_v33, %v4376_v14  ;;  %v716_v42 = vrot.slane %v702_v38, %v4376_v14  ;;  %v2911_v38 = vld.sshfl [vmem:[%s4743_s6] sm:$0x11 pattern:$0x75316420]  ;;  %s4086_s6 = smov [#allocation13]  }
 0x2a3   :  { %s2869_s20 = sshll.u32 %s4086_s6, 4  ;;  %s2870_s20 = int_to_ptr.vmem [resolvable:$true] %s2869_s20 }
 0x2a4   :  { %v719_v47 = vadd.f32 %v709_v41, %v536_v45  ;;  %v720_v48 = vadd.f32 %v716_v42, %v538_v46  ;;  %v781_v42 = vcombine.high %v2911_v38, %v2911_v38  ;;  %s3996_s1 = scalar_lea.vmem %s2870_s20, 32  ;;  %p4001_p5 = scmp.lt.s32.totalorder %s2870_s20, %s2870_s20 }
 0x2a5   :  { %p3997_p4 = scmp.ne.s32.totalorder %s2870_s20, %s3996_s1  ;;  %p4002_p6 = scmp.lt.s32.totalorder %s3996_s1, %s3996_s1 }
 0x2a6   :  { %v2905_v53 = vmul.f32 -1.442695, %v719_v47  ;;  %v2906_v54 = vmul.f32 -1.442695, %v720_v48  ;;  %v735_v57 = vrot.slane %v719_v47, 1  ;;  %v736_v60 = vrot.slane %v720_v48, 1 }
 0x2a7   :  { %v757_v1 = vrot.slane %v719_v47, 3  ;;  %v758_v2 = vrot.slane %v720_v48, 3  ;;  %v751_v5 = vrot.slane %v719_v47, 2  ;;  %v752_v10 = vrot.slane %v720_v48, 2  ;;  %p4003_p7 = por %p4002_p6, %p4001_p5 }
 0x2a8   :  { %3652 = vpow2.f32 %v2905_v53  ;;  %v2907_v61 = vmul.f32 -1.442695, %v735_v57  ;;  %v2908_v62 = vmul.f32 -1.442695, %v736_v60  ;;  %v788_v48 = vrot.slane %v2911_v38, %v4376_v14 }
 0x2a9   :  { %3654 = vpow2.f32 %v2906_v54  ;;  %v2909_v13 = vmul.f32 -1.442695, %v757_v1  ;;  %v2910_v17 = vmul.f32 -1.442695, %v758_v2  ;;  %v795_v54 = vrot.slane %v781_v42, %v4376_v14  ;;  %p4004_p8 = pnand %p4003_p7, %p3997_p4 }
 0x2aa   :  { %3656 = vpow2.f32 %v2907_v61 }
 0x2ab   :  { %3658 = vpow2.f32 %v2908_v62 }
 0x2ac   :  { %3660 = vtanh.f32 %v751_v5 }
 0x2ad   :  { %3662 = vtanh.f32 %v752_v10 }
 0x2ae   :  { %3664 = vpow2.f32 %v2909_v13 }
 0x2af   :  { %3666 = vpow2.f32 %v2910_v17 }
 0x2b2   :  { %v3653_v22 = vpop.eup %3652 }
 0x2b3   :  { %v3655_v25 = vpop.eup %3654  ;;  %v727_v27 = vadd.f32 1.0, %v3653_v22 }
 0x2b4   :  { %v3657_v29 = vpop.eup %3656  ;;  %v728_v32 = vadd.f32 1.0, %v3655_v25 }
 0x2b5   :  { %v3659_v37 = vpop.eup %3658  ;;  %3668 = vrcp.f32 %v727_v27  ;;  %v745_v35 = vadd.f32 1.0, %v3657_v29 }
 0x2b6   :  { %3670 = vrcp.f32 %v728_v32  ;;  %v746_v33 = vadd.f32 1.0, %v3659_v37  ;;  %v3661_v41 = vpop.eup %3660 }
 0x2b7   :  { %3672 = vrcp.f32 %v745_v35  ;;  %v3663_v45 = vpop.eup %3662 }
 0x2b8   :  { %3674 = vrcp.f32 %v746_v33  ;;  %v3665_v46 = vpop.eup %3664 }
 0x2b9   :  { %v3667_v47 = vpop.eup %3666  ;;  %v767_v60 = vadd.f32 1.0, %v3665_v46 }
 0x2ba   :  { %v768_v62 = vadd.f32 1.0, %v3667_v47 }
 0x2bb   :  { %3676 = vrcp.f32 %v767_v60 }
 0x2bc   :  { %3678 = vrcp.f32 %v768_v62 }
 0x2bf   :  { %v3669_v53 = vpop.eup %3668 }
 0x2c0   :  { %v3671_v57 = vpop.eup %3670  ;;  %v800_v2 = vmul.f32 %v3669_v53, %v3661_v41 }
 0x2c1   :  { %v3673_v61 = vpop.eup %3672  ;;  %v801_v10 = vmul.f32 %v3671_v57, %v3663_v45 }
 0x2c2   :  { %v3675_v1 = vpop.eup %3674  ;;  %v798_v5 = vmul.f32 %v3673_v61, %v788_v48 }
 0x2c3   :  { %v799_v13 = vmul.f32 %v3675_v1, %v795_v54 }
 0x2c4   :  { %v4387_v17 = vadd.f32 %v800_v2, %v798_v5  ;;  %v811_v2 = vld [vmem:[#allocation2 + $0x1] ss:$8 sm:$0xf] }
 0x2c5   :  { %v4389_v22 = vadd.f32 %v801_v10, %v799_v13  ;;  %v3677_v25 = vpop.eup %3676  ;;  %v813_v5 = vld [vmem:[#allocation2 + $0x21] ss:$8 sm:$0xf] }
 0x2c6   :  { %3680 = vtanh.f32 %v4387_v17  ;;  %v3679_v27 = vpop.eup %3678 }
 0x2c7   :  { %3682 = vtanh.f32 %v4389_v22 }
 0x2d0   :  { %v3681_v29 = vpop.eup %3680 }
 0x2d1   :  { %v3683_v32 = vpop.eup %3682  ;;  %v806_v37 = vmul.f32 %v3681_v29, %v3677_v25 }
 0x2d2   :  { %v807_v35 = vmul.f32 %v3683_v32, %v3679_v27 }
 0x2d3   :  { %808 = vst [vmem:[#allocation3] sm:$0x1] %v806_v37 }
 0x2d4   :  { %809 = vst [vmem:[#allocation3 + $0x8] sm:$0x1] %v807_v35  ;;  %v816_v33 = vcombine.low %v806_v37, %v807_v35 }
 0x2d6   :  { %v823_v38 = vrot.slane %v816_v33, %v4376_v14 }
 0x2d8   :  { %v830_v41 = vrot.slane %v823_v38, %v4376_v14 }
 0x2da   :  { %897 = vmatmul.mubr.f32.vlgmr.msra.gmra.mrb[6].mxu1 %v830_v41  ;;  %968 = vmatmul.mubr.f32.vlgmr.msra.gmra.mrb[10].mxu0 %v830_v41 }
 0x2db   :  { %3221 = vmatpush1.bf16.msra.mxu1 %v4228_v43  ;;  %3253 = vmatpush1.bf16.msra.mxu0 %v4230_v44 }
 0x2dc   :  { %3223 = vmatprep.subr.bf16.mxu1 %v4232_v51  ;;  %3255 = vmatprep.subr.bf16.mxu0 %v4234_v52 }
 0x2dd   :  { %1164 = vmatprep.mubr.f32.mxu1 %v4084_v31  ;;  %1235 = vmatprep.mubr.f32.mxu0 %v4084_v31 }
 0x2df   :  { %3225 = vmatpush1.bf16.msra.mxu1 %v4238_v58  ;;  %3257 = vmatpush1.bf16.msra.mxu0 %v4240_v59 }
 0x2e0   :  { %3227 = vmatprep.subr.bf16.mxu1 %v4244_v63  ;;  %3259 = vmatprep.subr.bf16.mxu0 %v4246_v0 }
 0x2e3   :  { %3229 = vmatpush1.bf16.msra.mxu1 %v4252_v7  ;;  %3261 = vmatpush1.bf16.msra.mxu0 %v4254_v8 }
 0x2e4   :  { %3231 = vmatprep.subr.bf16.mxu1 %v4258_v11  ;;  %3263 = vmatprep.subr.bf16.mxu0 %v4260_v12 }
 0x2e7   :  { %3233 = vmatpush1.bf16.msra.mxu1 %v4266_v19  ;;  %3265 = vmatpush1.bf16.msra.mxu0 %v4268_v20 }
 0x2e8   :  { %3235 = vmatprep.subr.bf16.mxu1 %v4272_v23  ;;  %3267 = vmatprep.subr.bf16.mxu0 %v4274_v24 }
 0x2eb   :  { %3237 = vmatpush1.bf16.msra.mxu1 %v4278_v34  ;;  %3269 = vmatpush1.bf16.msra.mxu0 %v4280_v36 }
 0x2ec   :  { %3239 = vmatprep.subr.bf16.mxu1 %v4284_v39  ;;  %3271 = vmatprep.subr.bf16.mxu0 %v4286_v40 }
 0x2ef   :  { %3241 = vmatpush1.bf16.msra.mxu1 %v4290_v49  ;;  %3273 = vmatpush1.bf16.msra.mxu0 %v4292_v50 }
 0x2f0   :  { %3243 = vmatprep.subr.bf16.mxu1 %v4296_v55  ;;  %3275 = vmatprep.subr.bf16.mxu0 %v4298_v56 }
 0x2f3   :  { %3245 = vmatpush1.bf16.msra.mxu1 %v4302_v3  ;;  %3277 = vmatpush1.bf16.msra.mxu0 %v4304_v4 }
 0x2f4   :  { %3247 = vmatprep.subr.bf16.mxu1 %v4308_v6  ;;  %3279 = vmatprep.subr.bf16.mxu0 %v4310_v9 }
 0x2f7   :  { %3249 = vmatpush1.bf16.msra.mxu1 %v4314_v15  ;;  %3281 = vmatpush1.bf16.msra.mxu0 %v4316_v16 }
 0x2f8   :  { %3283 = vmatprep.subr.bf16.mxu1 %v4220_v28  ;;  %3315 = vmatprep.subr.bf16.mxu0 %v4222_v30 }
 0x3ad   :  { %v898_v42 = vpop.f32.mrb[6].mxu1  ;;  %v969_v45 = vpop.f32.mrb[10].mxu0 }
 0x3ae   :  { %v900_v46 = vpop.f32.mrb[7].mxu1  ;;  %v971_v47 = vpop.f32.mrb[11].mxu0 }
 0x3af   :  { %v978_v48 = vcombine.low %v898_v42, %v900_v46  ;;  %v979_v53 = vcombine.low %v969_v45, %v971_v47 }
 0x3b1   :  { %v986_v54 = vrot.slane %v978_v48, %v4376_v14  ;;  %v993_v57 = vrot.slane %v979_v53, %v4376_v14 }
 0x3b3   :  { %v994_v60 = vcombine.low %v986_v54, %v993_v57  ;;  %v995_v61 = vcombine.high %v986_v54, %v993_v57 }
 0x3b5   :  { %v1002_v62 = vrot.slane %v994_v60, %v4376_v14  ;;  %v1009_v1 = vrot.slane %v995_v61, %v4376_v14 }
 0x3b7   :  { %v1012_v10 = vadd.f32 %v1002_v62, %v811_v2  ;;  %v1013_v13 = vadd.f32 %v1009_v1, %v813_v5 }
 0x3b9   :  { %v2912_v25 = vmul.f32 -1.442695, %v1012_v10  ;;  %v2913_v27 = vmul.f32 -1.442695, %v1013_v13  ;;  %v1028_v29 = vrot.slane %v1012_v10, 1  ;;  %v1029_v32 = vrot.slane %v1013_v13, 1 }
 0x3ba   :  { %v1050_v33 = vrot.slane %v1012_v10, 3  ;;  %v1051_v38 = vrot.slane %v1013_v13, 3  ;;  %v1044_v41 = vrot.slane %v1012_v10, 2  ;;  %v1045_v42 = vrot.slane %v1013_v13, 2 }
 0x3bb   :  { %3684 = vpow2.f32 %v2912_v25  ;;  %v2914_v37 = vmul.f32 -1.442695, %v1028_v29  ;;  %v2915_v35 = vmul.f32 -1.442695, %v1029_v32 }
 0x3bc   :  { %3686 = vpow2.f32 %v2913_v27  ;;  %v2916_v45 = vmul.f32 -1.442695, %v1050_v33  ;;  %v2917_v46 = vmul.f32 -1.442695, %v1051_v38 }
 0x3bd   :  { %3688 = vpow2.f32 %v2914_v37 }
 0x3be   :  { %3690 = vpow2.f32 %v2915_v35 }
 0x3bf   :  { %3692 = vtanh.f32 %v1044_v41 }
 0x3c0   :  { %3694 = vtanh.f32 %v1045_v42 }
 0x3c1   :  { %3696 = vpow2.f32 %v2916_v45 }
 0x3c2   :  { %3698 = vpow2.f32 %v2917_v46 }
 0x3c5   :  { %v3685_v47 = vpop.eup %3684 }
 0x3c6   :  { %v3687_v48 = vpop.eup %3686  ;;  %v1020_v53 = vadd.f32 1.0, %v3685_v47 }
 0x3c7   :  { %v3689_v54 = vpop.eup %3688  ;;  %v1021_v57 = vadd.f32 1.0, %v3687_v48 }
 0x3c8   :  { %v3691_v60 = vpop.eup %3690  ;;  %3700 = vrcp.f32 %v1020_v53  ;;  %v1038_v61 = vadd.f32 1.0, %v3689_v54 }
 0x3c9   :  { %3702 = vrcp.f32 %v1021_v57  ;;  %v1039_v62 = vadd.f32 1.0, %v3691_v60  ;;  %v3693_v1 = vpop.eup %3692 }
 0x3ca   :  { %3704 = vrcp.f32 %v1038_v61  ;;  %v3695_v2 = vpop.eup %3694 }
 0x3cb   :  { %3706 = vrcp.f32 %v1039_v62  ;;  %v3697_v5 = vpop.eup %3696 }
 0x3cc   :  { %v3699_v10 = vpop.eup %3698  ;;  %v1060_v27 = vadd.f32 1.0, %v3697_v5 }
 0x3cd   :  { %v1061_v32 = vadd.f32 1.0, %v3699_v10 }
 0x3ce   :  { %3708 = vrcp.f32 %v1060_v27 }
 0x3cf   :  { %3710 = vrcp.f32 %v1061_v32 }
 0x3d2   :  { %v3701_v13 = vpop.eup %3700 }
 0x3d3   :  { %v3703_v25 = vpop.eup %3702  ;;  %v1068_v35 = vmul.f32 %v3701_v13, %v3693_v1 }
 0x3d4   :  { %v3705_v29 = vpop.eup %3704  ;;  %v1069_v38 = vmul.f32 %v3703_v25, %v3695_v2 }
 0x3d5   :  { %v3707_v37 = vpop.eup %3706  ;;  %v1066_v33 = vmul.f32 %v3705_v29, %v4387_v17 }
 0x3d6   :  { %v1067_v41 = vmul.f32 %v3707_v37, %v4389_v22 }
 0x3d7   :  { %v4435_v42 = vadd.f32 %v1068_v35, %v1066_v33  ;;  %v1079_v35 = vld [vmem:[#allocation2 + $0x2] ss:$8 sm:$0xf] }
 0x3d8   :  { %v4437_v45 = vadd.f32 %v1069_v38, %v1067_v41  ;;  %v3709_v46 = vpop.eup %3708  ;;  %v1081_v33 = vld [vmem:[#allocation2 + $0x22] ss:$8 sm:$0xf] }
 0x3d9   :  { %3712 = vtanh.f32 %v4435_v42  ;;  %v3711_v47 = vpop.eup %3710 }
 0x3da   :  { %3714 = vtanh.f32 %v4437_v45 }
 0x3e3   :  { %v3713_v48 = vpop.eup %3712 }
 0x3e4   :  { %v3715_v53 = vpop.eup %3714  ;;  %v1074_v54 = vmul.f32 %v3713_v48, %v3709_v46 }
 0x3e5   :  { %v1075_v57 = vmul.f32 %v3715_v53, %v3711_v47 }
 0x3e6   :  { %1076 = vst [vmem:[#allocation3 + $0x1] sm:$0x1] %v1074_v54 }
 0x3e7   :  { %1077 = vst [vmem:[#allocation3 + $0x9] sm:$0x1] %v1075_v57  ;;  %v1084_v17 = vcombine.low %v1074_v54, %v1075_v57 }
 0x3e9   :  { %v1091_v22 = vrot.slane %v1084_v17, %v4376_v14 }
 0x3eb   :  { %v1098_v60 = vrot.slane %v1091_v22, %v4376_v14 }
 0x3ed   :  { %1165 = vmatmul.mubr.f32.vlgmr.msra.gmra.mrb[8].mxu1 %v1098_v60  ;;  %1236 = vmatmul.mubr.f32.vlgmr.msra.gmra.mrb[12].mxu0 %v1098_v60 }
 0x3ee   :  { %3285 = vmatpush1.bf16.msra.mxu1 %v4228_v43  ;;  %3317 = vmatpush1.bf16.msra.mxu0 %v4230_v44 }
 0x3ef   :  { %3287 = vmatprep.subr.bf16.mxu1 %v4232_v51  ;;  %3319 = vmatprep.subr.bf16.mxu0 %v4234_v52 }
 0x3f0   :  { %1432 = vmatprep.mubr.f32.mxu1 %v4084_v31  ;;  %1503 = vmatprep.mubr.f32.mxu0 %v4084_v31 }
 0x3f2   :  { %3289 = vmatpush1.bf16.msra.mxu1 %v4238_v58  ;;  %3321 = vmatpush1.bf16.msra.mxu0 %v4240_v59 }
 0x3f3   :  { %3291 = vmatprep.subr.bf16.mxu1 %v4244_v63  ;;  %3323 = vmatprep.subr.bf16.mxu0 %v4246_v0 }
 0x3f6   :  { %3293 = vmatpush1.bf16.msra.mxu1 %v4252_v7  ;;  %3325 = vmatpush1.bf16.msra.mxu0 %v4254_v8 }
 0x3f7   :  { %3295 = vmatprep.subr.bf16.mxu1 %v4258_v11  ;;  %3327 = vmatprep.subr.bf16.mxu0 %v4260_v12 }
 0x3fa   :  { %3297 = vmatpush1.bf16.msra.mxu1 %v4266_v19  ;;  %3329 = vmatpush1.bf16.msra.mxu0 %v4268_v20 }
 0x3fb   :  { %3299 = vmatprep.subr.bf16.mxu1 %v4272_v23  ;;  %3331 = vmatprep.subr.bf16.mxu0 %v4274_v24 }
 0x3fe   :  { %3301 = vmatpush1.bf16.msra.mxu1 %v4278_v34  ;;  %3333 = vmatpush1.bf16.msra.mxu0 %v4280_v36 }
 0x3ff   :  { %3303 = vmatprep.subr.bf16.mxu1 %v4284_v39  ;;  %3335 = vmatprep.subr.bf16.mxu0 %v4286_v40 }
 0x402   :  { %3305 = vmatpush1.bf16.msra.mxu1 %v4290_v49  ;;  %3337 = vmatpush1.bf16.msra.mxu0 %v4292_v50 }
 0x403   :  { %3307 = vmatprep.subr.bf16.mxu1 %v4296_v55  ;;  %3339 = vmatprep.subr.bf16.mxu0 %v4298_v56 }
 0x406   :  { %3309 = vmatpush1.bf16.msra.mxu1 %v4302_v3  ;;  %3341 = vmatpush1.bf16.msra.mxu0 %v4304_v4 }
 0x407   :  { %3311 = vmatprep.subr.bf16.mxu1 %v4308_v6  ;;  %3343 = vmatprep.subr.bf16.mxu0 %v4310_v9 }
 0x40a   :  { %3313 = vmatpush1.bf16.msra.mxu1 %v4314_v15  ;;  %3345 = vmatpush1.bf16.msra.mxu0 %v4316_v16 }
 0x40b   :  { %3347 = vmatprep.subr.bf16.mxu1 %v4220_v28  ;;  %3379 = vmatprep.subr.bf16.mxu0 %v4222_v30 }
 0x4c0   :  { %v1166_v61 = vpop.f32.mrb[8].mxu1  ;;  %v1237_v62 = vpop.f32.mrb[12].mxu0 }
 0x4c1   :  { %v1168_v1 = vpop.f32.mrb[9].mxu1  ;;  %v1239_v2 = vpop.f32.mrb[13].mxu0 }
 0x4c2   :  { %v1246_v5 = vcombine.low %v1166_v61, %v1168_v1  ;;  %v1247_v10 = vcombine.low %v1237_v62, %v1239_v2 }
 0x4c4   :  { %v1254_v13 = vrot.slane %v1246_v5, %v4376_v14  ;;  %v1261_v25 = vrot.slane %v1247_v10, %v4376_v14 }
 0x4c6   :  { %v1262_v27 = vcombine.low %v1254_v13, %v1261_v25  ;;  %v1263_v29 = vcombine.high %v1254_v13, %v1261_v25 }
 0x4c8   :  { %v1270_v32 = vrot.slane %v1262_v27, %v4376_v14  ;;  %v1277_v37 = vrot.slane %v1263_v29, %v4376_v14 }
 0x4ca   :  { %v1280_v38 = vadd.f32 %v1270_v32, %v1079_v35  ;;  %v1281_v41 = vadd.f32 %v1277_v37, %v1081_v33 }
 0x4cc   :  { %v2918_v46 = vmul.f32 -1.442695, %v1280_v38  ;;  %v2919_v47 = vmul.f32 -1.442695, %v1281_v41  ;;  %v1296_v48 = vrot.slane %v1280_v38, 1  ;;  %v1297_v53 = vrot.slane %v1281_v41, 1 }
 0x4cd   :  { %v1318_v17 = vrot.slane %v1280_v38, 3  ;;  %v1319_v22 = vrot.slane %v1281_v41, 3  ;;  %v1312_v60 = vrot.slane %v1280_v38, 2  ;;  %v1313_v61 = vrot.slane %v1281_v41, 2 }
 0x4ce   :  { %3716 = vpow2.f32 %v2918_v46  ;;  %v2920_v54 = vmul.f32 -1.442695, %v1296_v48  ;;  %v2921_v57 = vmul.f32 -1.442695, %v1297_v53 }
 0x4cf   :  { %3718 = vpow2.f32 %v2919_v47  ;;  %v2922_v62 = vmul.f32 -1.442695, %v1318_v17  ;;  %v2923_v1 = vmul.f32 -1.442695, %v1319_v22 }
 0x4d0   :  { %3720 = vpow2.f32 %v2920_v54 }
 0x4d1   :  { %3722 = vpow2.f32 %v2921_v57 }
 0x4d2   :  { %3724 = vtanh.f32 %v1312_v60 }
 0x4d3   :  { %3726 = vtanh.f32 %v1313_v61 }
 0x4d4   :  { %3728 = vpow2.f32 %v2922_v62 }
 0x4d5   :  { %3730 = vpow2.f32 %v2923_v1 }
 0x4d8   :  { %v3717_v2 = vpop.eup %3716 }
 0x4d9   :  { %v3719_v5 = vpop.eup %3718  ;;  %v1288_v10 = vadd.f32 1.0, %v3717_v2 }
 0x4da   :  { %v3721_v13 = vpop.eup %3720  ;;  %v1289_v25 = vadd.f32 1.0, %v3719_v5 }
 0x4db   :  { %v3723_v27 = vpop.eup %3722  ;;  %3732 = vrcp.f32 %v1288_v10  ;;  %v1306_v29 = vadd.f32 1.0, %v3721_v13 }
 0x4dc   :  { %3734 = vrcp.f32 %v1289_v25  ;;  %v1307_v32 = vadd.f32 1.0, %v3723_v27  ;;  %v3725_v37 = vpop.eup %3724 }
 0x4dd   :  { %3736 = vrcp.f32 %v1306_v29  ;;  %v3727_v35 = vpop.eup %3726 }
 0x4de   :  { %3738 = vrcp.f32 %v1307_v32  ;;  %v3729_v33 = vpop.eup %3728 }
 0x4df   :  { %v3731_v38 = vpop.eup %3730  ;;  %v1328_v47 = vadd.f32 1.0, %v3729_v33 }
 0x4e0   :  { %v1329_v53 = vadd.f32 1.0, %v3731_v38 }
 0x4e1   :  { %3740 = vrcp.f32 %v1328_v47 }
 0x4e2   :  { %3742 = vrcp.f32 %v1329_v53 }
 0x4e5   :  { %v3733_v41 = vpop.eup %3732 }
 0x4e6   :  { %v3735_v46 = vpop.eup %3734  ;;  %v1336_v57 = vmul.f32 %v3733_v41, %v3725_v37 }
 0x4e7   :  { %v3737_v48 = vpop.eup %3736  ;;  %v1337_v22 = vmul.f32 %v3735_v46, %v3727_v35 }
 0x4e8   :  { %v3739_v54 = vpop.eup %3738  ;;  %v1334_v17 = vmul.f32 %v3737_v48, %v4435_v42 }
 0x4e9   :  { %v1335_v60 = vmul.f32 %v3739_v54, %v4437_v45 }
 0x4ea   :  { %v4483_v61 = vadd.f32 %v1336_v57, %v1334_v17  ;;  %v1347_v57 = vld [vmem:[#allocation2 + $0x3] ss:$8 sm:$0xf] }
 0x4eb   :  { %v4485_v62 = vadd.f32 %v1337_v22, %v1335_v60  ;;  %v3741_v1 = vpop.eup %3740  ;;  %v1349_v17 = vld [vmem:[#allocation2 + $0x23] ss:$8 sm:$0xf] }
 0x4ec   :  { %3744 = vtanh.f32 %v4483_v61  ;;  %v3743_v2 = vpop.eup %3742 }
 0x4ed   :  { %3746 = vtanh.f32 %v4485_v62 }
 0x4f6   :  { %v3745_v5 = vpop.eup %3744 }
 0x4f7   :  { %v3747_v10 = vpop.eup %3746  ;;  %v1342_v13 = vmul.f32 %v3745_v5, %v3741_v1 }
 0x4f8   :  { %v1343_v25 = vmul.f32 %v3747_v10, %v3743_v2 }
 0x4f9   :  { %1344 = vst [vmem:[#allocation3 + $0x2] sm:$0x1] %v1342_v13 }
 0x4fa   :  { %1345 = vst [vmem:[#allocation3 + $0xa] sm:$0x1] %v1343_v25  ;;  %v1352_v42 = vcombine.low %v1342_v13, %v1343_v25 }
 0x4fc   :  { %v1359_v45 = vrot.slane %v1352_v42, %v4376_v14 }
 0x4fe   :  { %v1366_v27 = vrot.slane %v1359_v45, %v4376_v14 }
 0x500   :  { %1433 = vmatmul.mubr.f32.vlgmr.msra.gmra.mrb[10].mxu1 %v1366_v27  ;;  %1504 = vmatmul.mubr.f32.vlgmr.msra.gmra.mrb[14].mxu0 %v1366_v27 }
 0x501   :  { %3349 = vmatpush1.bf16.msra.mxu1 %v4228_v43  ;;  %3381 = vmatpush1.bf16.msra.mxu0 %v4230_v44 }
 0x502   :  { %3351 = vmatprep.subr.bf16.mxu1 %v4232_v51  ;;  %3383 = vmatprep.subr.bf16.mxu0 %v4234_v52 }
 0x503   :  { %1700 = vmatprep.mubr.f32.mxu1 %v4084_v31  ;;  %1771 = vmatprep.mubr.f32.mxu0 %v4084_v31 }
 0x505   :  { %3353 = vmatpush1.bf16.msra.mxu1 %v4238_v58  ;;  %3385 = vmatpush1.bf16.msra.mxu0 %v4240_v59 }
 0x506   :  { %3355 = vmatprep.subr.bf16.mxu1 %v4244_v63  ;;  %3387 = vmatprep.subr.bf16.mxu0 %v4246_v0 }
 0x509   :  { %3357 = vmatpush1.bf16.msra.mxu1 %v4252_v7  ;;  %3389 = vmatpush1.bf16.msra.mxu0 %v4254_v8 }
 0x50a   :  { %3359 = vmatprep.subr.bf16.mxu1 %v4258_v11  ;;  %3391 = vmatprep.subr.bf16.mxu0 %v4260_v12 }
 0x50d   :  { %3361 = vmatpush1.bf16.msra.mxu1 %v4266_v19  ;;  %3393 = vmatpush1.bf16.msra.mxu0 %v4268_v20 }
 0x50e   :  { %3363 = vmatprep.subr.bf16.mxu1 %v4272_v23  ;;  %3395 = vmatprep.subr.bf16.mxu0 %v4274_v24 }
 0x511   :  { %3365 = vmatpush1.bf16.msra.mxu1 %v4278_v34  ;;  %3397 = vmatpush1.bf16.msra.mxu0 %v4280_v36 }
 0x512   :  { %3367 = vmatprep.subr.bf16.mxu1 %v4284_v39  ;;  %3399 = vmatprep.subr.bf16.mxu0 %v4286_v40 }
 0x515   :  { %3369 = vmatpush1.bf16.msra.mxu1 %v4290_v49  ;;  %3401 = vmatpush1.bf16.msra.mxu0 %v4292_v50 }
 0x516   :  { %3371 = vmatprep.subr.bf16.mxu1 %v4296_v55  ;;  %3403 = vmatprep.subr.bf16.mxu0 %v4298_v56 }
 0x519   :  { %3373 = vmatpush1.bf16.msra.mxu1 %v4302_v3  ;;  %3405 = vmatpush1.bf16.msra.mxu0 %v4304_v4 }
 0x51a   :  { %3375 = vmatprep.subr.bf16.mxu1 %v4308_v6  ;;  %3407 = vmatprep.subr.bf16.mxu0 %v4310_v9 }
 0x51d   :  { %3377 = vmatpush1.bf16.msra.mxu1 %v4314_v15  ;;  %3409 = vmatpush1.bf16.msra.mxu0 %v4316_v16 }
 0x51e   :  { %3411 = vmatprep.subr.bf16.mxu1 %v4220_v28  ;;  %3443 = vmatprep.subr.bf16.mxu0 %v4222_v30 }
 0x5d3   :  { %v1434_v29 = vpop.f32.mrb[10].mxu1  ;;  %v1505_v32 = vpop.f32.mrb[14].mxu0 }
 0x5d4   :  { %v1436_v37 = vpop.f32.mrb[11].mxu1  ;;  %v1507_v35 = vpop.f32.mrb[15].mxu0 }
 0x5d5   :  { %v1514_v33 = vcombine.low %v1434_v29, %v1436_v37  ;;  %v1515_v38 = vcombine.low %v1505_v32, %v1507_v35 }
 0x5d7   :  { %v1522_v41 = vrot.slane %v1514_v33, %v4376_v14  ;;  %v1529_v46 = vrot.slane %v1515_v38, %v4376_v14 }
 0x5d9   :  { %v1530_v47 = vcombine.low %v1522_v41, %v1529_v46  ;;  %v1531_v48 = vcombine.high %v1522_v41, %v1529_v46 }
 0x5db   :  { %v1538_v53 = vrot.slane %v1530_v47, %v4376_v14  ;;  %v1545_v54 = vrot.slane %v1531_v48, %v4376_v14 }
 0x5dd   :  { %v1548_v22 = vadd.f32 %v1538_v53, %v1347_v57  ;;  %v1549_v60 = vadd.f32 %v1545_v54, %v1349_v17 }
 0x5df   :  { %v2924_v1 = vmul.f32 -1.442695, %v1548_v22  ;;  %v2925_v2 = vmul.f32 -1.442695, %v1549_v60  ;;  %v1564_v5 = vrot.slane %v1548_v22, 1  ;;  %v1565_v10 = vrot.slane %v1549_v60, 1 }
 0x5e0   :  { %v1586_v42 = vrot.slane %v1548_v22, 3  ;;  %v1587_v45 = vrot.slane %v1549_v60, 3  ;;  %v1580_v27 = vrot.slane %v1548_v22, 2  ;;  %v1581_v29 = vrot.slane %v1549_v60, 2 }
 0x5e1   :  { %3748 = vpow2.f32 %v2924_v1  ;;  %v2926_v13 = vmul.f32 -1.442695, %v1564_v5  ;;  %v2927_v25 = vmul.f32 -1.442695, %v1565_v10 }
 0x5e2   :  { %3750 = vpow2.f32 %v2925_v2  ;;  %v2928_v32 = vmul.f32 -1.442695, %v1586_v42  ;;  %v2929_v37 = vmul.f32 -1.442695, %v1587_v45 }
 0x5e3   :  { %3752 = vpow2.f32 %v2926_v13 }
 0x5e4   :  { %3754 = vpow2.f32 %v2927_v25 }
 0x5e5   :  { %3756 = vtanh.f32 %v1580_v27 }
 0x5e6   :  { %3758 = vtanh.f32 %v1581_v29 }
 0x5e7   :  { %3760 = vpow2.f32 %v2928_v32 }
 0x5e8   :  { %3762 = vpow2.f32 %v2929_v37 }
 0x5eb   :  { %v3749_v35 = vpop.eup %3748 }
 0x5ec   :  { %v3751_v33 = vpop.eup %3750  ;;  %v1556_v38 = vadd.f32 1.0, %v3749_v35 }
 0x5ed   :  { %v3753_v41 = vpop.eup %3752  ;;  %v1557_v46 = vadd.f32 1.0, %v3751_v33 }
 0x5ee   :  { %v3755_v47 = vpop.eup %3754  ;;  %3764 = vrcp.f32 %v1556_v38  ;;  %v1574_v48 = vadd.f32 1.0, %v3753_v41 }
 0x5ef   :  { %3766 = vrcp.f32 %v1557_v46  ;;  %v1575_v53 = vadd.f32 1.0, %v3755_v47  ;;  %v3757_v54 = vpop.eup %3756 }
 0x5f0   :  { %3768 = vrcp.f32 %v1574_v48  ;;  %v3759_v57 = vpop.eup %3758 }
 0x5f1   :  { %3770 = vrcp.f32 %v1575_v53  ;;  %v3761_v17 = vpop.eup %3760 }
 0x5f2   :  { %v3763_v22 = vpop.eup %3762  ;;  %v1596_v2 = vadd.f32 1.0, %v3761_v17 }
 0x5f3   :  { %v1597_v10 = vadd.f32 1.0, %v3763_v22 }
 0x5f4   :  { %3772 = vrcp.f32 %v1596_v2 }
 0x5f5   :  { %3774 = vrcp.f32 %v1597_v10 }
 0x5f8   :  { %v3765_v60 = vpop.eup %3764 }
 0x5f9   :  { %v3767_v1 = vpop.eup %3766  ;;  %v1604_v25 = vmul.f32 %v3765_v60, %v3757_v54 }
 0x5fa   :  { %v3769_v5 = vpop.eup %3768  ;;  %v1605_v45 = vmul.f32 %v3767_v1, %v3759_v57 }
 0x5fb   :  { %v3771_v13 = vpop.eup %3770  ;;  %v1602_v42 = vmul.f32 %v3769_v5, %v4483_v61 }
 0x5fc   :  { %v1603_v27 = vmul.f32 %v3771_v13, %v4485_v62 }
 0x5fd   :  { %v4531_v29 = vadd.f32 %v1604_v25, %v1602_v42  ;;  %v1615_v25 = vld [vmem:[#allocation2 + $0x4] ss:$8 sm:$0xf] }
 0x5fe   :  { %v4533_v32 = vadd.f32 %v1605_v45, %v1603_v27  ;;  %v3773_v37 = vpop.eup %3772  ;;  %v1617_v42 = vld [vmem:[#allocation2 + $0x24] ss:$8 sm:$0xf] }
 0x5ff   :  { %3776 = vtanh.f32 %v4531_v29  ;;  %v3775_v35 = vpop.eup %3774 }
 0x600   :  { %3778 = vtanh.f32 %v4533_v32 }
 0x609   :  { %v3777_v33 = vpop.eup %3776 }
 0x60a   :  { %v3779_v38 = vpop.eup %3778  ;;  %v1610_v41 = vmul.f32 %v3777_v33, %v3773_v37 }
 0x60b   :  { %v1611_v46 = vmul.f32 %v3779_v38, %v3775_v35 }
 0x60c   :  { %1612 = vst [vmem:[#allocation3 + $0x3] sm:$0x1] %v1610_v41 }
 0x60d   :  { %1613 = vst [vmem:[#allocation3 + $0xb] sm:$0x1] %v1611_v46  ;;  %v1620_v61 = vcombine.low %v1610_v41, %v1611_v46 }
 0x60f   :  { %v1627_v62 = vrot.slane %v1620_v61, %v4376_v14 }
 0x611   :  { %v1634_v47 = vrot.slane %v1627_v62, %v4376_v14 }
 0x613   :  { %1701 = vmatmul.mubr.f32.vlgmr.msra.gmra.mrb[12].mxu1 %v1634_v47  ;;  %1772 = vmatmul.mubr.f32.vlgmr.msra.gmra.mrb[16].mxu0 %v1634_v47 }
 0x614   :  { %3413 = vmatpush1.bf16.msra.mxu1 %v4228_v43  ;;  %3445 = vmatpush1.bf16.msra.mxu0 %v4230_v44 }
 0x615   :  { %3415 = vmatprep.subr.bf16.mxu1 %v4232_v51  ;;  %3447 = vmatprep.subr.bf16.mxu0 %v4234_v52 }
 0x616   :  { %1968 = vmatprep.mubr.f32.mxu1 %v4084_v31  ;;  %2039 = vmatprep.mubr.f32.mxu0 %v4084_v31 }
 0x618   :  { %3417 = vmatpush1.bf16.msra.mxu1 %v4238_v58  ;;  %3449 = vmatpush1.bf16.msra.mxu0 %v4240_v59 }
 0x619   :  { %3419 = vmatprep.subr.bf16.mxu1 %v4244_v63  ;;  %3451 = vmatprep.subr.bf16.mxu0 %v4246_v0 }
 0x61c   :  { %3421 = vmatpush1.bf16.msra.mxu1 %v4252_v7  ;;  %3453 = vmatpush1.bf16.msra.mxu0 %v4254_v8 }
 0x61d   :  { %3423 = vmatprep.subr.bf16.mxu1 %v4258_v11  ;;  %3455 = vmatprep.subr.bf16.mxu0 %v4260_v12 }
 0x620   :  { %3425 = vmatpush1.bf16.msra.mxu1 %v4266_v19  ;;  %3457 = vmatpush1.bf16.msra.mxu0 %v4268_v20 }
 0x621   :  { %3427 = vmatprep.subr.bf16.mxu1 %v4272_v23  ;;  %3459 = vmatprep.subr.bf16.mxu0 %v4274_v24 }
 0x624   :  { %3429 = vmatpush1.bf16.msra.mxu1 %v4278_v34  ;;  %3461 = vmatpush1.bf16.msra.mxu0 %v4280_v36 }
 0x625   :  { %3431 = vmatprep.subr.bf16.mxu1 %v4284_v39  ;;  %3463 = vmatprep.subr.bf16.mxu0 %v4286_v40 }
 0x628   :  { %3433 = vmatpush1.bf16.msra.mxu1 %v4290_v49  ;;  %3465 = vmatpush1.bf16.msra.mxu0 %v4292_v50 }
 0x629   :  { %3435 = vmatprep.subr.bf16.mxu1 %v4296_v55  ;;  %3467 = vmatprep.subr.bf16.mxu0 %v4298_v56 }
 0x62c   :  { %3437 = vmatpush1.bf16.msra.mxu1 %v4302_v3  ;;  %3469 = vmatpush1.bf16.msra.mxu0 %v4304_v4 }
 0x62d   :  { %3439 = vmatprep.subr.bf16.mxu1 %v4308_v6  ;;  %3471 = vmatprep.subr.bf16.mxu0 %v4310_v9 }
 0x630   :  { %3441 = vmatpush1.bf16.msra.mxu1 %v4314_v15  ;;  %3473 = vmatpush1.bf16.msra.mxu0 %v4316_v16 }
 0x631   :  { %3475 = vmatprep.subr.bf16.mxu1 %v4220_v28  ;;  %3507 = vmatprep.subr.bf16.mxu0 %v4222_v30 }
 0x6e6   :  { %v1702_v48 = vpop.f32.mrb[12].mxu1  ;;  %v1773_v53 = vpop.f32.mrb[16].mxu0 }
 0x6e7   :  { %v1704_v54 = vpop.f32.mrb[13].mxu1  ;;  %v1775_v57 = vpop.f32.mrb[17].mxu0 }
 0x6e8   :  { %v1782_v17 = vcombine.low %v1702_v48, %v1704_v54  ;;  %v1783_v22 = vcombine.low %v1773_v53, %v1775_v57 }
 0x6ea   :  { %v1790_v60 = vrot.slane %v1782_v17, %v4376_v14  ;;  %v1797_v1 = vrot.slane %v1783_v22, %v4376_v14 }
 0x6ec   :  { %v1798_v2 = vcombine.low %v1790_v60, %v1797_v1  ;;  %v1799_v5 = vcombine.high %v1790_v60, %v1797_v1 }
 0x6ee   :  { %v1806_v10 = vrot.slane %v1798_v2, %v4376_v14  ;;  %v1813_v13 = vrot.slane %v1799_v5, %v4376_v14 }
 0x6f0   :  { %v1816_v45 = vadd.f32 %v1806_v10, %v1615_v25  ;;  %v1817_v27 = vadd.f32 %v1813_v13, %v1617_v42 }
 0x6f2   :  { %v2930_v37 = vmul.f32 -1.442695, %v1816_v45  ;;  %v2931_v35 = vmul.f32 -1.442695, %v1817_v27  ;;  %v1832_v33 = vrot.slane %v1816_v45, 1  ;;  %v1833_v38 = vrot.slane %v1817_v27, 1 }
 0x6f3   :  { %v1854_v61 = vrot.slane %v1816_v45, 3  ;;  %v1855_v62 = vrot.slane %v1817_v27, 3  ;;  %v1848_v47 = vrot.slane %v1816_v45, 2  ;;  %v1849_v48 = vrot.slane %v1817_v27, 2 }
 0x6f4   :  { %3780 = vpow2.f32 %v2930_v37  ;;  %v2932_v41 = vmul.f32 -1.442695, %v1832_v33  ;;  %v2933_v46 = vmul.f32 -1.442695, %v1833_v38 }
 0x6f5   :  { %3782 = vpow2.f32 %v2931_v35  ;;  %v2934_v53 = vmul.f32 -1.442695, %v1854_v61  ;;  %v2935_v54 = vmul.f32 -1.442695, %v1855_v62 }
 0x6f6   :  { %3784 = vpow2.f32 %v2932_v41 }
 0x6f7   :  { %3786 = vpow2.f32 %v2933_v46 }
 0x6f8   :  { %3788 = vtanh.f32 %v1848_v47 }
 0x6f9   :  { %3790 = vtanh.f32 %v1849_v48 }
 0x6fa   :  { %3792 = vpow2.f32 %v2934_v53 }
 0x6fb   :  { %3794 = vpow2.f32 %v2935_v54 }
 0x6fe   :  { %v3781_v57 = vpop.eup %3780 }
 0x6ff   :  { %v3783_v17 = vpop.eup %3782  ;;  %v1824_v22 = vadd.f32 1.0, %v3781_v57 }
 0x700   :  { %v3785_v60 = vpop.eup %3784  ;;  %v1825_v1 = vadd.f32 1.0, %v3783_v17 }
 0x701   :  { %v3787_v2 = vpop.eup %3786  ;;  %3796 = vrcp.f32 %v1824_v22  ;;  %v1842_v5 = vadd.f32 1.0, %v3785_v60 }
 0x702   :  { %3798 = vrcp.f32 %v1825_v1  ;;  %v1843_v10 = vadd.f32 1.0, %v3787_v2  ;;  %v3789_v13 = vpop.eup %3788 }
 0x703   :  { %3800 = vrcp.f32 %v1842_v5  ;;  %v3791_v25 = vpop.eup %3790 }
 0x704   :  { %3802 = vrcp.f32 %v1843_v10  ;;  %v3793_v42 = vpop.eup %3792 }
 0x705   :  { %v3795_v45 = vpop.eup %3794  ;;  %v1864_v35 = vadd.f32 1.0, %v3793_v42 }
 0x706   :  { %v1865_v38 = vadd.f32 1.0, %v3795_v45 }
 0x707   :  { %3804 = vrcp.f32 %v1864_v35 }
 0x708   :  { %3806 = vrcp.f32 %v1865_v38 }
 0x70b   :  { %v3797_v27 = vpop.eup %3796 }
 0x70c   :  { %v3799_v37 = vpop.eup %3798  ;;  %v1872_v46 = vmul.f32 %v3797_v27, %v3789_v13 }
 0x70d   :  { %v3801_v33 = vpop.eup %3800  ;;  %v1873_v62 = vmul.f32 %v3799_v37, %v3791_v25 }
 0x70e   :  { %v3803_v41 = vpop.eup %3802  ;;  %v1870_v61 = vmul.f32 %v3801_v33, %v4531_v29 }
 0x70f   :  { %v1871_v47 = vmul.f32 %v3803_v41, %v4533_v32 }
 0x710   :  { %v4579_v48 = vadd.f32 %v1872_v46, %v1870_v61  ;;  %v1883_v46 = vld [vmem:[#allocation2 + $0x5] ss:$8 sm:$0xf] }
 0x711   :  { %v4581_v53 = vadd.f32 %v1873_v62, %v1871_v47  ;;  %v3805_v54 = vpop.eup %3804 }
 0x712   :  { %3808 = vtanh.f32 %v4579_v48  ;;  %v3807_v57 = vpop.eup %3806 }
 0x713   :  { %3810 = vtanh.f32 %v4581_v53 }
 0x71c   :  { %v3809_v17 = vpop.eup %3808 }
 0x71d   :  { %v3811_v22 = vpop.eup %3810  ;;  %v1878_v60 = vmul.f32 %v3809_v17, %v3805_v54 }
 0x71e   :  { %v1879_v1 = vmul.f32 %v3811_v22, %v3807_v57 }
 0x71f   :  { %1880 = vst [vmem:[#allocation3 + $0x4] sm:$0x1] %v1878_v60 }
 0x720   :  { %1881 = vst [vmem:[#allocation3 + $0xc] sm:$0x1] %v1879_v1  ;;  %v1888_v29 = vcombine.low %v1878_v60, %v1879_v1 }
 0x722   :  { %v1895_v32 = vrot.slane %v1888_v29, %v4376_v14 }
 0x724   :  { %v1902_v2 = vrot.slane %v1895_v32, %v4376_v14 }
 0x726   :  { %1969 = vmatmul.mubr.f32.vlgmr.msra.gmra.mrb[14].mxu1 %v1902_v2  ;;  %2040 = vmatmul.mubr.f32.vlgmr.msra.gmra.mrb[18].mxu0 %v1902_v2 }
 0x727   :  { %3477 = vmatpush1.bf16.msra.mxu1 %v4228_v43  ;;  %3509 = vmatpush1.bf16.msra.mxu0 %v4230_v44 }
 0x728   :  { %3479 = vmatprep.subr.bf16.mxu1 %v4232_v51  ;;  %3511 = vmatprep.subr.bf16.mxu0 %v4234_v52 }
 0x729   :  { %2236 = vmatprep.mubr.f32.mxu1 %v4084_v31  ;;  %2307 = vmatprep.mubr.f32.mxu0 %v4084_v31 }
 0x72b   :  { %3481 = vmatpush1.bf16.msra.mxu1 %v4238_v58  ;;  %3513 = vmatpush1.bf16.msra.mxu0 %v4240_v59 }
 0x72c   :  { %3483 = vmatprep.subr.bf16.mxu1 %v4244_v63  ;;  %3515 = vmatprep.subr.bf16.mxu0 %v4246_v0 }
 0x72f   :  { %3485 = vmatpush1.bf16.msra.mxu1 %v4252_v7  ;;  %3517 = vmatpush1.bf16.msra.mxu0 %v4254_v8 }
 0x730   :  { %3487 = vmatprep.subr.bf16.mxu1 %v4258_v11  ;;  %3519 = vmatprep.subr.bf16.mxu0 %v4260_v12 }
 0x733   :  { %3489 = vmatpush1.bf16.msra.mxu1 %v4266_v19  ;;  %3521 = vmatpush1.bf16.msra.mxu0 %v4268_v20 }
 0x734   :  { %3491 = vmatprep.subr.bf16.mxu1 %v4272_v23  ;;  %3523 = vmatprep.subr.bf16.mxu0 %v4274_v24 }
 0x737   :  { %3493 = vmatpush1.bf16.msra.mxu1 %v4278_v34  ;;  %3525 = vmatpush1.bf16.msra.mxu0 %v4280_v36 }
 0x738   :  { %3495 = vmatprep.subr.bf16.mxu1 %v4284_v39  ;;  %3527 = vmatprep.subr.bf16.mxu0 %v4286_v40 }
 0x73b   :  { %3497 = vmatpush1.bf16.msra.mxu1 %v4290_v49  ;;  %3529 = vmatpush1.bf16.msra.mxu0 %v4292_v50 }
 0x73c   :  { %3499 = vmatprep.subr.bf16.mxu1 %v4296_v55  ;;  %3531 = vmatprep.subr.bf16.mxu0 %v4298_v56 }
 0x73f   :  { %3501 = vmatpush1.bf16.msra.mxu1 %v4302_v3  ;;  %3533 = vmatpush1.bf16.msra.mxu0 %v4304_v4 }
 0x740   :  { %3503 = vmatprep.subr.bf16.mxu1 %v4308_v6  ;;  %3535 = vmatprep.subr.bf16.mxu0 %v4310_v9 }
 0x743   :  { %3505 = vmatpush1.bf16.msra.mxu1 %v4314_v15  ;;  %3537 = vmatpush1.bf16.msra.mxu0 %v4316_v16 }
 0x744   :  { %3539 = vmatprep.subr.bf16.mxu1 %v4220_v28  ;;  %3571 = vmatprep.subr.bf16.mxu0 %v4222_v30  ;;  %v1885_v28 = vld [vmem:[#allocation2 + $0x25] ss:$8 sm:$0xf] }
 0x7f9   :  { %v1970_v5 = vpop.f32.mrb[14].mxu1  ;;  %v2041_v10 = vpop.f32.mrb[18].mxu0 }
 0x7fa   :  { %v1972_v13 = vpop.f32.mrb[15].mxu1  ;;  %v2043_v25 = vpop.f32.mrb[19].mxu0 }
 0x7fb   :  { %v2050_v42 = vcombine.low %v1970_v5, %v1972_v13  ;;  %v2051_v45 = vcombine.low %v2041_v10, %v2043_v25 }
 0x7fd   :  { %v2058_v27 = vrot.slane %v2050_v42, %v4376_v14  ;;  %v2065_v37 = vrot.slane %v2051_v45, %v4376_v14 }
 0x7ff   :  { %v2066_v35 = vcombine.low %v2058_v27, %v2065_v37  ;;  %v2067_v33 = vcombine.high %v2058_v27, %v2065_v37 }
 0x801   :  { %v2074_v38 = vrot.slane %v2066_v35, %v4376_v14  ;;  %v2081_v41 = vrot.slane %v2067_v33, %v4376_v14 }
 0x803   :  { %v2084_v61 = vadd.f32 %v2074_v38, %v1883_v46  ;;  %v2085_v30 = vadd.f32 %v2081_v41, %v1885_v28 }
 0x805   :  { %v2936_v62 = vmul.f32 -1.442695, %v2084_v61  ;;  %v2937_v47 = vmul.f32 -1.442695, %v2085_v30  ;;  %v2100_v54 = vrot.slane %v2084_v61, 1  ;;  %v2101_v57 = vrot.slane %v2085_v30, 1 }
 0x806   :  { %v2122_v60 = vrot.slane %v2084_v61, 3  ;;  %v2123_v1 = vrot.slane %v2085_v30, 3  ;;  %v2116_v29 = vrot.slane %v2084_v61, 2  ;;  %v2117_v32 = vrot.slane %v2085_v30, 2 }
 0x807   :  { %3812 = vpow2.f32 %v2936_v62  ;;  %v2938_v17 = vmul.f32 -1.442695, %v2100_v54  ;;  %v2939_v22 = vmul.f32 -1.442695, %v2101_v57 }
 0x808   :  { %3814 = vpow2.f32 %v2937_v47  ;;  %v2940_v2 = vmul.f32 -1.442695, %v2122_v60  ;;  %v2941_v5 = vmul.f32 -1.442695, %v2123_v1 }
 0x809   :  { %3816 = vpow2.f32 %v2938_v17 }
 0x80a   :  { %3818 = vpow2.f32 %v2939_v22 }
 0x80b   :  { %3820 = vtanh.f32 %v2116_v29 }
 0x80c   :  { %3822 = vtanh.f32 %v2117_v32 }
 0x80d   :  { %3824 = vpow2.f32 %v2940_v2 }
 0x80e   :  { %3826 = vpow2.f32 %v2941_v5 }
 0x811   :  { %v3813_v10 = vpop.eup %3812 }
 0x812   :  { %v3815_v13 = vpop.eup %3814  ;;  %v2092_v25 = vadd.f32 1.0, %v3813_v10 }
 0x813   :  { %v3817_v42 = vpop.eup %3816  ;;  %v2093_v45 = vadd.f32 1.0, %v3815_v13 }
 0x814   :  { %v3819_v27 = vpop.eup %3818  ;;  %3828 = vrcp.f32 %v2092_v25  ;;  %v2110_v37 = vadd.f32 1.0, %v3817_v42 }
 0x815   :  { %3830 = vrcp.f32 %v2093_v45  ;;  %v2111_v35 = vadd.f32 1.0, %v3819_v27  ;;  %v3821_v33 = vpop.eup %3820 }
 0x816   :  { %3832 = vrcp.f32 %v2110_v37  ;;  %v3823_v38 = vpop.eup %3822 }
 0x817   :  { %3834 = vrcp.f32 %v2111_v35  ;;  %v3825_v41 = vpop.eup %3824 }
 0x818   :  { %v3827_v46 = vpop.eup %3826  ;;  %v2132_v30 = vadd.f32 1.0, %v3825_v41 }
 0x819   :  { %v2133_v47 = vadd.f32 1.0, %v3827_v46 }
 0x81a   :  { %3836 = vrcp.f32 %v2132_v30 }
 0x81b   :  { %3838 = vrcp.f32 %v2133_v47 }
 0x81e   :  { %v3829_v28 = vpop.eup %3828 }
 0x81f   :  { %v3831_v61 = vpop.eup %3830  ;;  %v2140_v57 = vmul.f32 %v3829_v28, %v3821_v33 }
 0x820   :  { %v3833_v62 = vpop.eup %3832  ;;  %v2141_v22 = vmul.f32 %v3831_v61, %v3823_v38 }
 0x821   :  { %v3835_v54 = vpop.eup %3834  ;;  %v2138_v17 = vmul.f32 %v3833_v62, %v4579_v48 }
 0x822   :  { %v2139_v60 = vmul.f32 %v3835_v54, %v4581_v53 }
 0x823   :  { %v4627_v1 = vadd.f32 %v2140_v57, %v2138_v17 }
 0x824   :  { %v4629_v29 = vadd.f32 %v2141_v22, %v2139_v60  ;;  %v3837_v32 = vpop.eup %3836 }
 0x825   :  { %3840 = vtanh.f32 %v4627_v1  ;;  %v3839_v2 = vpop.eup %3838 }
 0x826   :  { %3842 = vtanh.f32 %v4629_v29 }
 0x82f   :  { %v3841_v5 = vpop.eup %3840 }
 0x830   :  { %v3843_v10 = vpop.eup %3842  ;;  %v2146_v13 = vmul.f32 %v3841_v5, %v3837_v32 }
 0x831   :  { %v2147_v25 = vmul.f32 %v3843_v10, %v3839_v2 }
 0x832   :  { %2148 = vst [vmem:[#allocation3 + $0x5] sm:$0x1] %v2146_v13 }
 0x833   :  { %2149 = vst [vmem:[#allocation3 + $0xd] sm:$0x1] %v2147_v25  ;;  %v2156_v48 = vcombine.low %v2146_v13, %v2147_v25 }
 0x835   :  { %v2163_v53 = vrot.slane %v2156_v48, %v4376_v14 }
 0x837   :  { %v2170_v42 = vrot.slane %v2163_v53, %v4376_v14 }
 0x839   :  { %2237 = vmatmul.mubr.f32.vlgmr.msra.gmra.mrb[16].mxu1 %v2170_v42  ;;  %2308 = vmatmul.mubr.f32.vlgmr.msra.gmra.mrb[20].mxu0 %v2170_v42 }
 0x83a   :  { %3541 = vmatpush1.bf16.msra.mxu1 %v4228_v43  ;;  %3573 = vmatpush1.bf16.msra.mxu0 %v4230_v44 }
 0x83b   :  { %3543 = vmatprep.subr.bf16.mxu1 %v4232_v51  ;;  %3575 = vmatprep.subr.bf16.mxu0 %v4234_v52 }
 0x83c   :  { %2504 = vmatprep.mubr.f32.mxu1 %v4084_v31  ;;  %2575 = vmatprep.mubr.f32.mxu0 %v4084_v31 }
 0x83e   :  { %3545 = vmatpush1.bf16.msra.mxu1 %v4238_v58  ;;  %3577 = vmatpush1.bf16.msra.mxu0 %v4240_v59 }
 0x83f   :  { %3547 = vmatprep.subr.bf16.mxu1 %v4244_v63  ;;  %3579 = vmatprep.subr.bf16.mxu0 %v4246_v0 }
 0x842   :  { %3549 = vmatpush1.bf16.msra.mxu1 %v4252_v7  ;;  %3581 = vmatpush1.bf16.msra.mxu0 %v4254_v8 }
 0x843   :  { %3551 = vmatprep.subr.bf16.mxu1 %v4258_v11  ;;  %3583 = vmatprep.subr.bf16.mxu0 %v4260_v12 }
 0x846   :  { %3553 = vmatpush1.bf16.msra.mxu1 %v4266_v19  ;;  %3585 = vmatpush1.bf16.msra.mxu0 %v4268_v20  ;;  %v2151_v19 = vld [vmem:[#allocation2 + $0x6] ss:$8 sm:$0xf] }
 0x847   :  { %3555 = vmatprep.subr.bf16.mxu1 %v4272_v23  ;;  %3587 = vmatprep.subr.bf16.mxu0 %v4274_v24  ;;  %v2153_v20 = vld [vmem:[#allocation2 + $0x26] ss:$8 sm:$0xf] }
 0x84a   :  { %3557 = vmatpush1.bf16.msra.mxu1 %v4278_v34  ;;  %3589 = vmatpush1.bf16.msra.mxu0 %v4280_v36 }
 0x84b   :  { %3559 = vmatprep.subr.bf16.mxu1 %v4284_v39  ;;  %3591 = vmatprep.subr.bf16.mxu0 %v4286_v40 }
 0x84e   :  { %3561 = vmatpush1.bf16.msra.mxu1 %v4290_v49  ;;  %3593 = vmatpush1.bf16.msra.mxu0 %v4292_v50 }
 0x84f   :  { %3563 = vmatprep.subr.bf16.mxu1 %v4296_v55  ;;  %3595 = vmatprep.subr.bf16.mxu0 %v4298_v56 }
 0x852   :  { %3565 = vmatpush1.bf16.msra.mxu1 %v4302_v3  ;;  %3597 = vmatpush1.bf16.msra.mxu0 %v4304_v4 }
 0x853   :  { %3567 = vmatprep.subr.bf16.mxu1 %v4308_v6  ;;  %3599 = vmatprep.subr.bf16.mxu0 %v4310_v9 }
 0x856   :  { %3569 = vmatpush1.bf16.msra.mxu1 %v4314_v15  ;;  %3601 = vmatpush1.bf16.msra.mxu0 %v4316_v16 }
 0x90c   :  { %v2238_v43 = vpop.f32.mrb[16].mxu1  ;;  %v2309_v44 = vpop.f32.mrb[20].mxu0 }
 0x90d   :  { %v2240_v51 = vpop.f32.mrb[17].mxu1  ;;  %v2311_v52 = vpop.f32.mrb[21].mxu0 }
 0x90e   :  { %v2318_v58 = vcombine.low %v2238_v43, %v2240_v51  ;;  %v2319_v59 = vcombine.low %v2309_v44, %v2311_v52  ;;  %v2727_v51 = vld [vmem:[#allocation10 + $0x8] sm:$0xff]  ;;  %v2729_v52 = vld [vmem:[#allocation10 + $0x18] sm:$0xff] }
 0x910   :  { %v2326_v63 = vrot.slane %v2318_v58, %v4376_v14  ;;  %v2333_v0 = vrot.slane %v2319_v59, %v4376_v14  ;;  %v3602_v58 = vpack.c.bf16 %v2729_v52, %v2727_v51  ;;  %v2726_v59 = vld [vmem:[#allocation10] sm:$0xff] }
 0x912   :  { %v2334_v7 = vcombine.low %v2326_v63, %v2333_v0  ;;  %v2335_v8 = vcombine.high %v2326_v63, %v2333_v0  ;;  %v2728_v63 = vld [vmem:[#allocation10 + $0x10] sm:$0xff]  ;;  %3603 = vmatprep.subr.bf16.mxu1 %v3602_v58 }
 0x913   :  { %v3604_v0 = vpack.c.bf16 %v2728_v63, %v2726_v59  ;;  %v2419_v59 = vld [vmem:[#allocation2 + $0x7] ss:$8 sm:$0xf] }
 0x914   :  { %v2342_v11 = vrot.slane %v2334_v7, %v4376_v14  ;;  %v2349_v12 = vrot.slane %v2335_v8, %v4376_v14  ;;  %v2731_v7 = vld [vmem:[#allocation10 + $0x28] sm:$0xff]  ;;  %v2733_v8 = vld [vmem:[#allocation10 + $0x38] sm:$0xff] }
 0x915   :  { %v2421_v63 = vld [vmem:[#allocation2 + $0x27] ss:$8 sm:$0xf] }
 0x916   :  { %v2352_v23 = vadd.f32 %v2342_v11, %v2151_v19  ;;  %v2353_v24 = vadd.f32 %v2349_v12, %v2153_v20  ;;  %v3606_v11 = vpack.c.bf16 %v2733_v8, %v2731_v7  ;;  %v2730_v12 = vld [vmem:[#allocation10 + $0x20] sm:$0xff]  ;;  %v2732_v19 = vld [vmem:[#allocation10 + $0x30] sm:$0xff] }
 0x917   :  { %v3608_v20 = vpack.c.bf16 %v2732_v19, %v2730_v12 }
 0x918   :  { %v2942_v34 = vmul.f32 -1.442695, %v2352_v23  ;;  %v2943_v36 = vmul.f32 -1.442695, %v2353_v24  ;;  %v2368_v39 = vrot.slane %v2352_v23, 1  ;;  %v2369_v40 = vrot.slane %v2353_v24, 1 }
 0x919   :  { %v2390_v55 = vrot.slane %v2352_v23, 3  ;;  %v2391_v56 = vrot.slane %v2353_v24, 3  ;;  %v2384_v3 = vrot.slane %v2352_v23, 2  ;;  %v2385_v4 = vrot.slane %v2353_v24, 2  ;;  %v2735_v23 = vld [vmem:[#allocation10 + $0x48] sm:$0xff]  ;;  %v2737_v24 = vld [vmem:[#allocation10 + $0x58] sm:$0xff] }
 0x91a   :  { %3844 = vpow2.f32 %v2942_v34  ;;  %v2944_v49 = vmul.f32 -1.442695, %v2368_v39  ;;  %v2945_v50 = vmul.f32 -1.442695, %v2369_v40  ;;  %v3610_v34 = vpack.c.bf16 %v2737_v24, %v2735_v23  ;;  %v2736_v39 = vld [vmem:[#allocation10 + $0x50] sm:$0xff] }
 0x91b   :  { %3846 = vpow2.f32 %v2943_v36  ;;  %v2946_v6 = vmul.f32 -1.442695, %v2390_v55  ;;  %v2947_v9 = vmul.f32 -1.442695, %v2391_v56  ;;  %v2734_v36 = vld [vmem:[#allocation10 + $0x40] sm:$0xff] }
 0x91c   :  { %3848 = vpow2.f32 %v2944_v49  ;;  %v3612_v40 = vpack.c.bf16 %v2736_v39, %v2734_v36  ;;  %v2739_v49 = vld [vmem:[#allocation10 + $0x68] sm:$0xff]  ;;  %v2738_v56 = vld [vmem:[#allocation10 + $0x60] sm:$0xff] }
 0x91d   :  { %3850 = vpow2.f32 %v2945_v50  ;;  %v2741_v50 = vld [vmem:[#allocation10 + $0x78] sm:$0xff] }
 0x91e   :  { %3852 = vtanh.f32 %v2384_v3  ;;  %v3614_v55 = vpack.c.bf16 %v2741_v50, %v2739_v49  ;;  %v2740_v3 = vld [vmem:[#allocation10 + $0x70] sm:$0xff] }
 0x91f   :  { %3854 = vtanh.f32 %v2385_v4  ;;  %v3616_v4 = vpack.c.bf16 %v2740_v3, %v2738_v56 }
 0x920   :  { %3856 = vpow2.f32 %v2946_v6  ;;  %v2743_v6 = vld [vmem:[#allocation10 + $0x88] sm:$0xff] }
 0x921   :  { %3858 = vpow2.f32 %v2947_v9  ;;  %v2745_v9 = vld [vmem:[#allocation10 + $0x98] sm:$0xff] }
 0x924   :  { %v3845_v15 = vpop.eup %3844 }
 0x925   :  { %v3847_v16 = vpop.eup %3846  ;;  %v2360_v45 = vadd.f32 1.0, %v3845_v15  ;;  %v3618_v15 = vpack.c.bf16 %v2745_v9, %v2743_v6 }
 0x926   :  { %v3849_v27 = vpop.eup %3848  ;;  %v2361_v37 = vadd.f32 1.0, %v3847_v16  ;;  %v2742_v16 = vld [vmem:[#allocation10 + $0x80] sm:$0xff] }
 0x927   :  { %v3851_v35 = vpop.eup %3850  ;;  %3860 = vrcp.f32 %v2360_v45  ;;  %v2378_v33 = vadd.f32 1.0, %v3849_v27  ;;  %v2744_v45 = vld [vmem:[#allocation10 + $0x90] sm:$0xff] }
 0x928   :  { %3862 = vrcp.f32 %v2361_v37  ;;  %v2379_v38 = vadd.f32 1.0, %v3851_v35  ;;  %v3853_v41 = vpop.eup %3852  ;;  %v3620_v27 = vpack.c.bf16 %v2744_v45, %v2742_v16  ;;  %v2747_v37 = vld [vmem:[#allocation10 + $0xa8] sm:$0xff]  ;;  %v2749_v35 = vld [vmem:[#allocation10 + $0xb8] sm:$0xff] }
 0x929   :  { %3864 = vrcp.f32 %v2378_v33  ;;  %v3855_v46 = vpop.eup %3854  ;;  %v3622_v33 = vpack.c.bf16 %v2749_v35, %v2747_v37 }
 0x92a   :  { %3866 = vrcp.f32 %v2379_v38  ;;  %v3857_v28 = vpop.eup %3856  ;;  %v2746_v38 = vld [vmem:[#allocation10 + $0xa0] sm:$0xff] }
 0x92b   :  { %v3859_v61 = vpop.eup %3858  ;;  %v2400_v47 = vadd.f32 1.0, %v3857_v28  ;;  %v2751_v28 = vld [vmem:[#allocation10 + $0xc8] sm:$0xff] }
 0x92c   :  { %v2401_v57 = vadd.f32 1.0, %v3859_v61  ;;  %v2753_v61 = vld [vmem:[#allocation10 + $0xd8] sm:$0xff] }
 0x92d   :  { %3868 = vrcp.f32 %v2400_v47  ;;  %v2752_v47 = vld [vmem:[#allocation10 + $0xd0] sm:$0xff] }
 0x92e   :  { %3870 = vrcp.f32 %v2401_v57  ;;  %v2757_v57 = vld [vmem:[#allocation10 + $0xf8] sm:$0xff] }
 0x931   :  { %v3861_v30 = vpop.eup %3860 }
 0x932   :  { %v3863_v62 = vpop.eup %3862  ;;  %v2408_v22 = vmul.f32 %v3861_v30, %v3853_v41  ;;  %v2748_v41 = vld [vmem:[#allocation10 + $0xb0] sm:$0xff]  ;;  %v2750_v30 = vld [vmem:[#allocation10 + $0xc0] sm:$0xff] }
 0x933   :  { %v3865_v54 = vpop.eup %3864  ;;  %v2409_v32 = vmul.f32 %v3863_v62, %v3855_v46  ;;  %v3624_v46 = vpack.c.bf16 %v2748_v41, %v2746_v38  ;;  %v3626_v62 = vpack.c.bf16 %v2753_v61, %v2751_v28 }
 0x934   :  { %v3867_v17 = vpop.eup %3866  ;;  %v2406_v60 = vmul.f32 %v3865_v54, %v4627_v1  ;;  %v2755_v54 = vld [vmem:[#allocation10 + $0xe8] sm:$0xff] }
 0x935   :  { %v2407_v2 = vmul.f32 %v3867_v17, %v4629_v29  ;;  %v3628_v17 = vpack.c.bf16 %v2752_v47, %v2750_v30 }
 0x936   :  { %v4673_v5 = vadd.f32 %v2408_v22, %v2406_v60  ;;  %v3630_v22 = vpack.c.bf16 %v2757_v57, %v2755_v54  ;;  %v2754_v60 = vld [vmem:[#allocation10 + $0xe0] sm:$0xff] }
 0x937   :  { %v4675_v10 = vadd.f32 %v2409_v32, %v2407_v2  ;;  %v3869_v13 = vpop.eup %3868  ;;  %v2756_v32 = vld [vmem:[#allocation10 + $0xf0] sm:$0xff] }
 0x938   :  { %3872 = vtanh.f32 %v4673_v5  ;;  %v3871_v25 = vpop.eup %3870  ;;  %v3632_v2 = vpack.c.bf16 %v2756_v32, %v2754_v60 }
 0x939   :  { %3874 = vtanh.f32 %v4675_v10 }
 0x942   :  { %v3873_v48 = vpop.eup %3872 }
 0x943   :  { %v3875_v53 = vpop.eup %3874  ;;  %v2414_v42 = vmul.f32 %v3873_v48, %v3869_v13 }
 0x944   :  { %v2415_v43 = vmul.f32 %v3875_v53, %v3871_v25 }
 0x945   :  { %2416 = vst [vmem:[#allocation3 + $0x6] sm:$0x1] %v2414_v42 }
 0x946   :  { %2417 = vst [vmem:[#allocation3 + $0xe] sm:$0x1] %v2415_v43  ;;  %v2424_v1 = vcombine.low %v2414_v42, %v2415_v43 }
 0x948   :  { %v2431_v29 = vrot.slane %v2424_v1, %v4376_v14 }
 0x94a   :  { %v2438_v44 = vrot.slane %v2431_v29, %v4376_v14 }
 0x94c   :  { %2505 = vmatmul.mubr.f32.vlgmr.msra.gmra.mrb[18].mxu1 %v2438_v44  ;;  %2576 = vmatmul.mubr.f32.vlgmr.msra.gmra.mrb[22].mxu0 %v2438_v44 }
 0x94d   :  { %2834 = vmatprep.mubr.f32.mxu1 %v4084_v31  ;;  %3605 = vmatpush1.bf16.msra.mxu1 %v3604_v0 }
 0x94e   :  { %3607 = vmatprep.subr.bf16.mxu1 %v3606_v11 }
 0x951   :  { %3609 = vmatpush1.bf16.msra.mxu1 %v3608_v20 }
 0x952   :  { %3611 = vmatprep.subr.bf16.mxu1 %v3610_v34 }
 0x955   :  { %3613 = vmatpush1.bf16.msra.mxu1 %v3612_v40 }
 0x956   :  { %3615 = vmatprep.subr.bf16.mxu1 %v3614_v55 }
 0x959   :  { %3617 = vmatpush1.bf16.msra.mxu1 %v3616_v4 }
 0x95a   :  { %3619 = vmatprep.subr.bf16.mxu1 %v3618_v15 }
 0x95d   :  { %3621 = vmatpush1.bf16.msra.mxu1 %v3620_v27 }
 0x95e   :  { %3623 = vmatprep.subr.bf16.mxu1 %v3622_v33 }
 0x961   :  { %3625 = vmatpush1.bf16.msra.mxu1 %v3624_v46 }
 0x962   :  { %3627 = vmatprep.subr.bf16.mxu1 %v3626_v62 }
 0x965   :  { %3629 = vmatpush1.bf16.msra.mxu1 %v3628_v17 }
 0x966   :  { %3631 = vmatprep.subr.bf16.mxu1 %v3630_v22 }
 0x969   :  { %3633 = vmatpush1.bf16.msra.mxu1 %v3632_v2 }
 0xa1f   :  { %v2506_v13 = vpop.f32.mrb[18].mxu1  ;;  %v2577_v25 = vpop.f32.mrb[22].mxu0 }
 0xa20   :  { %v2508_v48 = vpop.f32.mrb[19].mxu1  ;;  %v2579_v53 = vpop.f32.mrb[23].mxu0 }
 0xa21   :  { %v2586_v42 = vcombine.low %v2506_v13, %v2508_v48  ;;  %v2587_v43 = vcombine.low %v2577_v25, %v2579_v53 }
 0xa23   :  { %v2594_v1 = vrot.slane %v2586_v42, %v4376_v14  ;;  %v2601_v29 = vrot.slane %v2587_v43, %v4376_v14 }
 0xa25   :  { %v2602_v44 = vcombine.low %v2594_v1, %v2601_v29  ;;  %v2603_v51 = vcombine.high %v2594_v1, %v2601_v29 }
 0xa27   :  { %v2610_v52 = vrot.slane %v2602_v44, %v4376_v14  ;;  %v2617_v58 = vrot.slane %v2603_v51, %v4376_v14 }
 0xa29   :  { %v2620_v0 = vadd.f32 %v2610_v52, %v2419_v59  ;;  %v2621_v7 = vadd.f32 %v2617_v58, %v2421_v63 }
 0xa2b   :  { %v2948_v8 = vmul.f32 -1.442695, %v2620_v0  ;;  %v2949_v11 = vmul.f32 -1.442695, %v2621_v7  ;;  %v2636_v12 = vrot.slane %v2620_v0, 1  ;;  %v2637_v19 = vrot.slane %v2621_v7, 1 }
 0xa2c   :  { %v2658_v24 = vrot.slane %v2620_v0, 3  ;;  %v2659_v34 = vrot.slane %v2621_v7, 3  ;;  %v2652_v36 = vrot.slane %v2620_v0, 2  ;;  %v2653_v39 = vrot.slane %v2621_v7, 2 }
 0xa2d   :  { %3876 = vpow2.f32 %v2948_v8  ;;  %v2950_v20 = vmul.f32 -1.442695, %v2636_v12  ;;  %v2951_v23 = vmul.f32 -1.442695, %v2637_v19 }
 0xa2e   :  { %3878 = vpow2.f32 %v2949_v11  ;;  %v2952_v40 = vmul.f32 -1.442695, %v2658_v24  ;;  %v2953_v49 = vmul.f32 -1.442695, %v2659_v34 }
 0xa2f   :  { %3880 = vpow2.f32 %v2950_v20 }
 0xa30   :  { %3882 = vpow2.f32 %v2951_v23 }
 0xa31   :  { %3884 = vtanh.f32 %v2652_v36 }
 0xa32   :  { %3886 = vtanh.f32 %v2653_v39 }
 0xa33   :  { %3888 = vpow2.f32 %v2952_v40 }
 0xa34   :  { %3890 = vpow2.f32 %v2953_v49 }
 0xa37   :  { %v3877_v50 = vpop.eup %3876 }
 0xa38   :  { %v3879_v55 = vpop.eup %3878  ;;  %v2628_v56 = vadd.f32 1.0, %v3877_v50 }
 0xa39   :  { %v3881_v3 = vpop.eup %3880  ;;  %v2629_v4 = vadd.f32 1.0, %v3879_v55 }
 0xa3a   :  { %v3883_v6 = vpop.eup %3882  ;;  %3892 = vrcp.f32 %v2628_v56  ;;  %v2646_v9 = vadd.f32 1.0, %v3881_v3 }
 0xa3b   :  { %3894 = vrcp.f32 %v2629_v4  ;;  %v2647_v15 = vadd.f32 1.0, %v3883_v6  ;;  %v3885_v16 = vpop.eup %3884 }
 0xa3c   :  { %3896 = vrcp.f32 %v2646_v9  ;;  %v3887_v45 = vpop.eup %3886 }
 0xa3d   :  { %3898 = vrcp.f32 %v2647_v15  ;;  %v3889_v27 = vpop.eup %3888 }
 0xa3e   :  { %v3891_v37 = vpop.eup %3890  ;;  %v2668_v38 = vadd.f32 1.0, %v3889_v27 }
 0xa3f   :  { %v2669_v46 = vadd.f32 1.0, %v3891_v37 }
 0xa40   :  { %3900 = vrcp.f32 %v2668_v38 }
 0xa41   :  { %3902 = vrcp.f32 %v2669_v46 }
 0xa44   :  { %v3893_v35 = vpop.eup %3892 }
 0xa45   :  { %v3895_v33 = vpop.eup %3894  ;;  %v2676_v30 = vmul.f32 %v3893_v35, %v3885_v16 }
 0xa46   :  { %v3897_v41 = vpop.eup %3896  ;;  %v2677_v47 = vmul.f32 %v3895_v33, %v3887_v45 }
 0xa47   :  { %v3899_v28 = vpop.eup %3898  ;;  %v2674_v61 = vmul.f32 %v3897_v41, %v4673_v5 }
 0xa48   :  { %v2675_v62 = vmul.f32 %v3899_v28, %v4675_v10 }
 0xa49   :  { %v2678_v54 = vadd.f32 %v2676_v30, %v2674_v61 }
 0xa4a   :  { %v2679_v57 = vadd.f32 %v2677_v47, %v2675_v62  ;;  %v3901_v60 = vpop.eup %3900 }
 0xa4b   :  { %3904 = vtanh.f32 %v2678_v54  ;;  %v3903_v32 = vpop.eup %3902 }
 0xa4c   :  { %3906 = vtanh.f32 %v2679_v57  ;;  %v2707_v17 = vcombine.low %v2678_v54, %v2679_v57 }
 0xa4e   :  { %v2714_v22 = vrot.slane %v2707_v17, %v4376_v14 }
 0xa50   :  { %2955 = vst.sshfl [vmem:[#allocation15] sm:$0x5 pattern:$0x73625140] %v2714_v22 }
 0xa55   :  { %v3905_v2 = vpop.eup %3904 }
 0xa56   :  { %v3907_v13 = vpop.eup %3906  ;;  %v2682_v25 = vmul.f32 %v3905_v2, %v3901_v60 }
 0xa57   :  { %v2683_v5 = vmul.f32 %v3907_v13, %v3903_v32 }
 0xa58   :  { %2684 = vst [vmem:[#allocation3 + $0x7] sm:$0x1] %v2682_v25 }
 0xa59   :  { %2685 = vst [vmem:[#allocation3 + $0xf] sm:$0x1] %v2683_v5  ;;  %v2688_v10 = vcombine.low %v2682_v25, %v2683_v5 }
 0xa5b   :  { %v2695_v48 = vrot.slane %v2688_v10, %v4376_v14 }
 0xa5d   :  { %2954 = vst.sshfl [vmem:[#allocation13] sm:$0x5 pattern:$0x73625140] %v2695_v48 }
 0xa5f   :  { %v2724_v53 = vld [vmem:[#allocation3] sm:$0xff] }
 0xa60   :  { %2835 = vmatmul.mubr.f32.vlgmr.msra.gmra.mrb[20].mxu1 %v2724_v53  ;;  %v2725_v42 = vld [vmem:[#allocation3 + $0x8] sm:$0xff] }
 0xa61   :  { %2840 = vmatprep.mubr.f32.mxu1 %v4084_v31 }
 0xa64   :  { %2841 = vmatmul.mubr.f32.gmra.mrb[22].mxu1 %v2725_v42 }
 0xa65   :  { %4007 = shalt.err (!%p4004_p8)
}
 0xa66   :  { %s4008_s22 = scalar_lea.hbm %s4747_s10, 32 }
 0xa67   :  { %p4009_p9 = scmp.ne.s32.totalorder %s4747_s10, %s4008_s22  ;;  %p4012_p10 = scmp.lt.u32.totalorder %s4008_s22, %s4747_s10 }
 0xa69   :  { %p4014_p11 = pnand %p4012_p10, %p4009_p9 }
 0xa6b   :  { %4017 = shalt.err (!%p4014_p11)
}
 0xa6c   :  { %2872 = dma.vmem_to_hbm [thread:$0]  %s2870_s20, 32, %s4747_s10, [#allocation14]  }
 0xa6d   :  { %s4087_s12 = smov [#allocation15]  }
 0xa6e   :  { %s2879_s28 = sshll.u32 %s4087_s12, 4  ;;  %s2880_s28 = int_to_ptr.vmem [resolvable:$true] %s2879_s28 }
 0xa6f   :  { %s4018_s26 = scalar_lea.vmem %s2880_s28, 32  ;;  %p4023_p13 = scmp.lt.s32.totalorder %s2880_s28, %s2880_s28 }
 0xa70   :  { %p4019_p12 = scmp.ne.s32.totalorder %s2880_s28, %s4018_s26  ;;  %p4024_p0 = scmp.lt.s32.totalorder %s4018_s26, %s4018_s26 }
 0xa72   :  { %p4025_p1 = por %p4024_p0, %p4023_p13 }
 0xa74   :  { %p4026_p2 = pnand %p4025_p1, %p4019_p12 }
 0xa76   :  { %4029 = shalt.err (!%p4026_p2)
}
 0xa77   :  { %s4030_s16 = scalar_lea.hbm %s4748_s11, 32 }
 0xa78   :  { %p4031_p3 = scmp.ne.s32.totalorder %s4748_s11, %s4030_s16  ;;  %p4034_p4 = scmp.lt.u32.totalorder %s4030_s16, %s4748_s11 }
 0xa7a   :  { %p4036_p5 = pnand %p4034_p4, %p4031_p3 }
 0xa7c   :  { %4039 = shalt.err (!%p4036_p5)
}
 0xa7d   :  { %2882 = dma.vmem_to_hbm [thread:$0]  %s2880_s28, 32, %s4748_s11, [#allocation14]   ;;  %v2758_v31 = vld [vmem:[%s4745_s8] sm:$0x3] }
 0xa7e   :  { %v2763_v14 = vrot.slane %v2758_v31, %v290_v21  ;;  %v2767_v43 = vrot.slane %v2758_v31, %v294_v26  ;;  %s4088_s6 = smov [#allocation12]  }
 0xa7f   :  { %s2856_s20 = sshll.u32 %s4088_s6, 4  ;;  %s2857_s20 = int_to_ptr.vmem [resolvable:$true] %s2856_s20 }
 0xa80   :  { %s4040_s8 = scalar_lea.vmem %s2857_s20, 512  ;;  %p4045_p7 = scmp.lt.s32.totalorder %s2857_s20, %s2857_s20 }
 0xa81   :  { %p4041_p6 = scmp.ne.s32.totalorder %s2857_s20, %s4040_s8  ;;  %p4046_p8 = scmp.lt.s32.totalorder %s4040_s8, %s4040_s8 }
 0xa83   :  { %p4047_p9 = por %p4046_p8, %p4045_p7 }
 0xa85   :  { %p4048_p10 = pnand %p4047_p9, %p4041_p6 }
 0xb33   :  { %v2836_v1 = vpop.f32.mrb[20].mxu1 }
 0xb34   :  { %v2837_v29 = vadd.f32 %v2836_v1, %v2763_v14  ;;  %v2838_v44 = vpop.f32.mrb[21].mxu1 }
 0xb35   :  { %v2839_v51 = vadd.f32 %v2838_v44, %v2767_v43 }
 0xb36   :  { %2847 = vst [vmem:[#allocation12] sm:$0xff] %v2837_v29 }
 0xb37   :  { %2848 = vst [vmem:[#allocation12 + $0x8] sm:$0xff] %v2839_v51  ;;  %v2842_v52 = vpop.f32.mrb[22].mxu1 }
 0xb38   :  { %v2843_v58 = vadd.f32 %v2842_v52, %v2763_v14  ;;  %v2844_v59 = vpop.f32.mrb[23].mxu1 }
 0xb39   :  { %v2845_v63 = vadd.f32 %v2844_v59, %v2767_v43 }
 0xb3a   :  { %2849 = vst [vmem:[#allocation12 + $0x10] sm:$0xff] %v2843_v58 }
 0xb3b   :  { %2850 = vst [vmem:[#allocation12 + $0x18] sm:$0xff] %v2845_v63 }
 0xb3c   :  { %4051 = shalt.err (!%p4048_p10)
}
 0xb3d   :  { %s4052_s13 = scalar_lea.hbm %s4746_s9, 512 }
 0xb3e   :  { %p4053_p11 = scmp.ne.s32.totalorder %s4746_s9, %s4052_s13  ;;  %p4056_p12 = scmp.lt.u32.totalorder %s4052_s13, %s4746_s9 }
 0xb40   :  { %p4058_p13 = pnand %p4056_p12, %p4053_p11 }
 0xb42   :  { %4061 = shalt.err (!%p4058_p13)
}
 0xb43   :  { %2862 = dma.vmem_to_hbm [thread:$0]  %s2857_s20, 512, %s4746_s9, [#allocation6], %s4080_s3, %s4080_s3, %s4081_s27  }
 0xb44   :  { %4068 = dma.done.wait [#allocation6], 512  }
 0xb45   :  { %4069 = vsyncadd [#allocation6], 4294966784 }
 0xb46   :  { %4070 = dma.done.wait [#allocation14], 64  }
 0xb47   :  { %4071 = vsyncadd [#allocation14], 4294967232 }
 0xb48   :  { %2892 = vsyncpa [#allocation5], 1 }
 0xb49   :  { %2893 = vsyncpa [#allocation8], 1 }
 0xb4a   :  { %2894 = vsyncpa [#allocation11], 1 }
 0xb4b   :  { %2895 = vsyncpa [#allocation6], 1 }
 0xb4c   :  { %2896 = vsyncpa [#allocation14], 1 }

</bundles_post_ra>
